<compile_context>
chip_gen: v5e
topology: v5e:2x2
jax: 0.10.0
libtpu: 0.0.40
codegen_flags: <defaults>
</compile_context>

<pallas_src>
import functools

import jax
import jax.numpy as jnp
from jax import lax
from jax.experimental import pallas as pl
from jax.experimental.pallas import tpu as pltpu

# ----------------------------- hyperparameters -----------------------------
N_CLASSES = 8
LATENT_DIM = 8
N = 32                       # base hidden width (PyTorch default was 128)
CHANNELS = 4
IMG_SIZE = 16
IMG_FLAT = CHANNELS * IMG_SIZE * IMG_SIZE        # 1024
BATCH = 8                    # raise toward 128/256 for throughput; MXU rows are idle at 8

BN_EPS = 0.8                 # nn.BatchNorm1d(out_feat, 0.8) -> eps = 0.8
LRELU_SLOPE = 0.2


# ------------------------------ shared math ---------------------------------
def _leaky_relu(h):
    return jnp.where(h > 0, h, LRELU_SLOPE * h)


def _batchnorm(h, g, be):
    # training-mode BatchNorm1d: batch mean / biased batch variance
    mean = jnp.mean(h, axis=0, keepdims=True)
    var = jnp.mean((h - mean) * (h - mean), axis=0, keepdims=True)
    return (h - mean) * lax.rsqrt(var + BN_EPS) * g + be


def _bf16_dot(h, w_ref):
    # bf16 x bf16 MXU matmul, f32 accumulation.
    return jnp.dot(h.astype(jnp.bfloat16), w_ref[...],
                   preferred_element_type=jnp.float32)


# ------------------------------- Pallas kernel ------------------------------
def generator_kernel(labels_ref,            # (B, 1) int32, VMEM
                     noise_ref, t_ref,
                     w1_ref, b1_ref,
                     w2_ref, b2_ref, g2_ref, be2_ref,
                     w3_ref, b3_ref, g3_ref, be3_ref,
                     w4_ref, b4_ref, g4_ref, be4_ref,
                     w5_ref, b5_ref,
                     out_ref):
    B = noise_ref.shape[0]

    # Embedding lookup fused into layer 1 via one-hot matmul:
    #   h1 = noise @ w1[n_classes:] + one_hot(labels) @ (label_emb @ w1[:n_classes]) + b1
    one_hot = (lax.broadcasted_iota(jnp.int32, (B, N_CLASSES), 1)
               == labels_ref[...]).astype(jnp.float32)                 # (B, n_classes)
    emb = jnp.dot(one_hot, t_ref[...],
                  preferred_element_type=jnp.float32)                  # (B, N)

    h = _bf16_dot(noise_ref[...], w1_ref) + emb + b1_ref[...]
    h = _leaky_relu(h)                                                 # block 1 (no norm)
    h = _leaky_relu(_batchnorm(_bf16_dot(h, w2_ref) + b2_ref[...],
                               g2_ref[...], be2_ref[...]))             # block 2
    h = _leaky_relu(_batchnorm(_bf16_dot(h, w3_ref) + b3_ref[...],
                               g3_ref[...], be3_ref[...]))             # block 3
    h = _leaky_relu(_batchnorm(_bf16_dot(h, w4_ref) + b4_ref[...],
                               g4_ref[...], be4_ref[...]))             # block 4

    # output head: (B, 8N) @ (8N, 1024) -> tanh ; lane-dense (1024) store
    out_ref[...] = jnp.tanh(_bf16_dot(h, w5_ref) + b5_ref[...])


# ------------------------------- JAX wrapper ---------------------------------
def generator_forward(noise, labels, kp):
    B = noise.shape[0]
    labels2d = labels.reshape(B, 1).astype(jnp.int32)

    # Single invocation, no grid: every operand is one full VMEM-resident block.
    flat_img = pl.pallas_call(
        generator_kernel,
        out_shape=jax.ShapeDtypeStruct((B, IMG_FLAT), jnp.float32),
    )(labels2d, noise,
      kp["t_emb"], kp["w1n"], kp["b1"],
      kp["w2"], kp["b2"], kp["g2"], kp["be2"],
      kp["w3"], kp["b3"], kp["g3"], kp["be3"],
      kp["w4"], kp["b4"], kp["g4"], kp["be4"],
      kp["w5"], kp["b5"])

    # img.view(B, C, H, W) — row-major reshape, NCHW like PyTorch
    return flat_img.reshape(B, CHANNELS, IMG_SIZE, IMG_SIZE)


# ------------------------------ parameter init ------------------------------
def init_params(key):
    dims = [LATENT_DIM + N_CLASSES, N, 2 * N, 4 * N, 8 * N, IMG_FLAT]
    keys = jax.random.split(key, 16)
    ki = iter(range(16))

    def linear_init(k_w, k_b, fan_in, fan_out):
        bound = 1.0 / jnp.sqrt(fan_in)
        w = jax.random.uniform(k_w, (fan_in, fan_out), jnp.float32, -bound, bound)
        b = jax.random.uniform(k_b, (1, fan_out), jnp.float32, -bound, bound)
        return w, b

    params = {}
    params["label_emb"] = jax.random.normal(keys[next(ki)], (N_CLASSES, N_CLASSES),
                                            jnp.float32)

    for li in range(5):
        w, b = linear_init(keys[next(ki)], keys[next(ki)], dims[li], dims[li + 1])
        params[f"w{li + 1}"] = w
        params[f"b{li + 1}"] = b

    # BatchNorm affine params (layers 2..4): gamma=1, beta=0 at init
    for li in (2, 3, 4):
        params[f"g{li}"] = jnp.ones((1, dims[li]), jnp.float32)
        params[f"be{li}"] = jnp.zeros((1, dims[li]), jnp.float32)

    return params


def prepare_kernel_params(params):
    """One-time derivation of kernel-ready params (bf16 weights + fused emb table)."""
    w1 = params["w1"]
    kp = {
        # T[c] = label_emb[c] @ w1[:n_classes]  — embedding lookup folded into layer 1
        "t_emb": jnp.dot(params["label_emb"], w1[:N_CLASSES, :]),      # (n_classes, N) f32
        "w1n": w1[N_CLASSES:, :].astype(jnp.bfloat16),                 # (latent_dim, N)
        "b1": params["b1"],
    }
    for li in (2, 3, 4, 5):
        kp[f"w{li}"] = params[f"w{li}"].astype(jnp.bfloat16)
        kp[f"b{li}"] = params[f"b{li}"]
    for li in (2, 3, 4):
        kp[f"g{li}"] = params[f"g{li}"]
        kp[f"be{li}"] = params[f"be{li}"]
    return kp


# ------------------------------ pure-JAX reference ---------------------------
def generator_reference(noise, labels, params):
    emb = jnp.take(params["label_emb"], labels, axis=0)
    h = jnp.concatenate([emb, noise], axis=-1)
    h = _leaky_relu(h @ params["w1"] + params["b1"])
    for li in (2, 3, 4):
        h = _leaky_relu(_batchnorm(h @ params[f"w{li}"] + params[f"b{li}"],
                                   params[f"g{li}"], params[f"be{li}"]))
    h = jnp.tanh(h @ params["w5"] + params["b5"])
    return h.reshape(noise.shape[0], CHANNELS, IMG_SIZE, IMG_SIZE)


# ----------------------------------- main -----------------------------------
if __name__ == "__main__":
    key = jax.random.PRNGKey(0)
    k_params, k_noise, k_labels = jax.random.split(key, 3)

    params = init_params(k_params)
    kp = prepare_kernel_params(params)     # one-time: bf16 weights + fused emb table

    noise = jax.random.normal(k_noise, (BATCH, LATENT_DIM), jnp.float32)
    labels = jax.random.randint(k_labels, (BATCH,), 0, N_CLASSES, jnp.int32)

    fwd = jax.jit(functools.partial(generator_forward, kp=kp))
    img = fwd(noise, labels)
    jax.block_until_ready(img)

    assert img.shape == (BATCH, CHANNELS, IMG_SIZE, IMG_SIZE), img.shape
    assert img.dtype == jnp.float32

    # relaxed tolerance vs the f32 reference (weights are bf16 inside the kernel)
    ref = generator_reference(noise, labels, params)
    err = float(jnp.max(jnp.abs(img - ref)))
    assert err < 0.1, f"max abs error vs f32 reference: {err}"

    print("KERNEL_OK")
</pallas_src>

<mosaic_0001>
module attributes {stable_mosaic.version = 11 : i64} {
  func.func @generator_kernel(%arg0: memref<8x1xi32, #tpu.memory_space<vmem>>, %arg1: memref<8x8xf32, #tpu.memory_space<vmem>>, %arg2: memref<8x32xf32, #tpu.memory_space<vmem>>, %arg3: memref<8x32xbf16, #tpu.memory_space<vmem>>, %arg4: memref<1x32xf32, #tpu.memory_space<vmem>>, %arg5: memref<32x64xbf16, #tpu.memory_space<vmem>>, %arg6: memref<1x64xf32, #tpu.memory_space<vmem>>, %arg7: memref<1x64xf32, #tpu.memory_space<vmem>>, %arg8: memref<1x64xf32, #tpu.memory_space<vmem>>, %arg9: memref<64x128xbf16, #tpu.memory_space<vmem>>, %arg10: memref<1x128xf32, #tpu.memory_space<vmem>>, %arg11: memref<1x128xf32, #tpu.memory_space<vmem>>, %arg12: memref<1x128xf32, #tpu.memory_space<vmem>>, %arg13: memref<128x256xbf16, #tpu.memory_space<vmem>>, %arg14: memref<1x256xf32, #tpu.memory_space<vmem>>, %arg15: memref<1x256xf32, #tpu.memory_space<vmem>>, %arg16: memref<1x256xf32, #tpu.memory_space<vmem>>, %arg17: memref<256x1024xbf16, #tpu.memory_space<vmem>>, %arg18: memref<1x1024xf32, #tpu.memory_space<vmem>>, %arg19: memref<8x1024xf32, #tpu.memory_space<vmem>>) attributes {dimension_semantics = [], scalar_prefetch = 0 : i64, scratch_operands = 0 : i64, tpu.core_type = #tpu.core_type<tc>} {
    %0 = tpu.iota {dimensions = array<i32: 1>} : vector<8x8xi32>
    %c0 = arith.constant 0 : index
    %c0_0 = arith.constant 0 : index
    %1 = vector.load %arg0[%c0, %c0_0] : memref<8x1xi32, #tpu.memory_space<vmem>>, vector<8x1xi32>
    %2 = vector.broadcast %1 : vector<8x1xi32> to vector<8x8xi32>
    %3 = arith.cmpi eq, %0, %2 : vector<8x8xi32>
    %4 = arith.extui %3 : vector<8x8xi1> to vector<8x8xi32>
    %5 = arith.sitofp %4 : vector<8x8xi32> to vector<8x8xf32>
    %c0_1 = arith.constant 0 : index
    %c0_2 = arith.constant 0 : index
    %6 = vector.load %arg2[%c0_1, %c0_2] : memref<8x32xf32, #tpu.memory_space<vmem>>, vector<8x32xf32>
    %cst = arith.constant dense<0.000000e+00> : vector<8x32xf32>
    %7 = tpu.matmul %5, %6, %cst {dimension_numbers = #tpu.dot_dimension_numbers<[1], [0], [0], [1], [0, 0, 1, 1], [], []>} : vector<8x8xf32>, vector<8x32xf32>, vector<8x32xf32> -> vector<8x32xf32>
    %c0_3 = arith.constant 0 : index
    %c0_4 = arith.constant 0 : index
    %8 = vector.load %arg1[%c0_3, %c0_4] : memref<8x8xf32, #tpu.memory_space<vmem>>, vector<8x8xf32>
    %9 = arith.truncf %8 : vector<8x8xf32> to vector<8x8xbf16>
    %c0_5 = arith.constant 0 : index
    %c0_6 = arith.constant 0 : index
    %10 = vector.load %arg3[%c0_5, %c0_6] : memref<8x32xbf16, #tpu.memory_space<vmem>>, vector<8x32xbf16>
    %cst_7 = arith.constant dense<0.000000e+00> : vector<8x32xf32>
    %11 = tpu.matmul %9, %10, %cst_7 {dimension_numbers = #tpu.dot_dimension_numbers<[1], [0], [0], [1], [0, 0, 1, 1], [], []>} : vector<8x8xbf16>, vector<8x32xbf16>, vector<8x32xf32> -> vector<8x32xf32>
    %12 = arith.addf %11, %7 : vector<8x32xf32>
    %c0_8 = arith.constant 0 : index
    %c0_9 = arith.constant 0 : index
    %13 = vector.load %arg4[%c0_8, %c0_9] : memref<1x32xf32, #tpu.memory_space<vmem>>, vector<1x32xf32>
    %14 = vector.broadcast %13 : vector<1x32xf32> to vector<8x32xf32>
    %15 = arith.addf %12, %14 : vector<8x32xf32>
    %cst_10 = arith.constant 0.000000e+00 : f32
    %16 = vector.broadcast %cst_10 : f32 to vector<8x32xf32>
    %17 = arith.cmpf ogt, %15, %16 : vector<8x32xf32>
    %cst_11 = arith.constant 2.000000e-01 : f32
    %18 = vector.broadcast %cst_11 : f32 to vector<8x32xf32>
    %19 = arith.mulf %18, %15 : vector<8x32xf32>
    %20 = arith.select %17, %15, %19 : vector<8x32xi1>, vector<8x32xf32>
    %21 = arith.truncf %20 : vector<8x32xf32> to vector<8x32xbf16>
    %c0_12 = arith.constant 0 : index
    %c0_13 = arith.constant 0 : index
    %22 = vector.load %arg5[%c0_12, %c0_13] : memref<32x64xbf16, #tpu.memory_space<vmem>>, vector<32x64xbf16>
    %cst_14 = arith.constant dense<0.000000e+00> : vector<8x64xf32>
    %23 = tpu.matmul %21, %22, %cst_14 {dimension_numbers = #tpu.dot_dimension_numbers<[1], [0], [0], [1], [0, 0, 1, 1], [], []>} : vector<8x32xbf16>, vector<32x64xbf16>, vector<8x64xf32> -> vector<8x64xf32>
    %c0_15 = arith.constant 0 : index
    %c0_16 = arith.constant 0 : index
    %24 = vector.load %arg6[%c0_15, %c0_16] : memref<1x64xf32, #tpu.memory_space<vmem>>, vector<1x64xf32>
    %25 = vector.broadcast %24 : vector<1x64xf32> to vector<8x64xf32>
    %26 = arith.addf %23, %25 : vector<8x64xf32>
    %c0_17 = arith.constant 0 : index
    %c0_18 = arith.constant 0 : index
    %27 = vector.load %arg7[%c0_17, %c0_18] : memref<1x64xf32, #tpu.memory_space<vmem>>, vector<1x64xf32>
    %c0_19 = arith.constant 0 : index
    %c0_20 = arith.constant 0 : index
    %28 = vector.load %arg8[%c0_19, %c0_20] : memref<1x64xf32, #tpu.memory_space<vmem>>, vector<1x64xf32>
    %cst_21 = arith.constant dense<0.000000e+00> : vector<64xf32>
    %29 = vector.multi_reduction <add>, %26, %cst_21 [0] : vector<8x64xf32> to vector<64xf32>
    %30 = vector.shape_cast %29 : vector<64xf32> to vector<1x64xf32>
    %cst_22 = arith.constant 8.000000e+00 : f32
    %31 = vector.broadcast %cst_22 : f32 to vector<1x64xf32>
    %32 = arith.divf %30, %31 : vector<1x64xf32>
    %33 = vector.broadcast %32 : vector<1x64xf32> to vector<8x64xf32>
    %34 = arith.subf %26, %33 : vector<8x64xf32>
    %35 = vector.broadcast %32 : vector<1x64xf32> to vector<8x64xf32>
    %36 = arith.subf %26, %35 : vector<8x64xf32>
    %37 = arith.mulf %34, %36 : vector<8x64xf32>
    %cst_23 = arith.constant dense<0.000000e+00> : vector<64xf32>
    %38 = vector.multi_reduction <add>, %37, %cst_23 [0] : vector<8x64xf32> to vector<64xf32>
    %39 = vector.shape_cast %38 : vector<64xf32> to vector<1x64xf32>
    %cst_24 = arith.constant 8.000000e+00 : f32
    %40 = vector.broadcast %cst_24 : f32 to vector<1x64xf32>
    %41 = arith.divf %39, %40 : vector<1x64xf32>
    %42 = vector.broadcast %32 : vector<1x64xf32> to vector<8x64xf32>
    %43 = arith.subf %26, %42 : vector<8x64xf32>
    %cst_25 = arith.constant 8.000000e-01 : f32
    %44 = vector.broadcast %cst_25 : f32 to vector<1x64xf32>
    %45 = arith.addf %41, %44 : vector<1x64xf32>
    %46 = math.rsqrt %45 : vector<1x64xf32>
    %47 = vector.broadcast %46 : vector<1x64xf32> to vector<8x64xf32>
    %48 = arith.mulf %43, %47 : vector<8x64xf32>
    %49 = vector.broadcast %27 : vector<1x64xf32> to vector<8x64xf32>
    %50 = arith.mulf %48, %49 : vector<8x64xf32>
    %51 = vector.broadcast %28 : vector<1x64xf32> to vector<8x64xf32>
    %52 = arith.addf %50, %51 : vector<8x64xf32>
    %cst_26 = arith.constant 0.000000e+00 : f32
    %53 = vector.broadcast %cst_26 : f32 to vector<8x64xf32>
    %54 = arith.cmpf ogt, %52, %53 : vector<8x64xf32>
    %cst_27 = arith.constant 2.000000e-01 : f32
    %55 = vector.broadcast %cst_27 : f32 to vector<8x64xf32>
    %56 = arith.mulf %55, %52 : vector<8x64xf32>
    %57 = arith.select %54, %52, %56 : vector<8x64xi1>, vector<8x64xf32>
    %58 = arith.truncf %57 : vector<8x64xf32> to vector<8x64xbf16>
    %c0_28 = arith.constant 0 : index
    %c0_29 = arith.constant 0 : index
    %59 = vector.load %arg9[%c0_28, %c0_29] : memref<64x128xbf16, #tpu.memory_space<vmem>>, vector<64x128xbf16>
    %cst_30 = arith.constant dense<0.000000e+00> : vector<8x128xf32>
    %60 = tpu.matmul %58, %59, %cst_30 {dimension_numbers = #tpu.dot_dimension_numbers<[1], [0], [0], [1], [0, 0, 1, 1], [], []>} : vector<8x64xbf16>, vector<64x128xbf16>, vector<8x128xf32> -> vector<8x128xf32>
    %c0_31 = arith.constant 0 : index
    %c0_32 = arith.constant 0 : index
    %61 = vector.load %arg10[%c0_31, %c0_32] : memref<1x128xf32, #tpu.memory_space<vmem>>, vector<1x128xf32>
    %62 = vector.broadcast %61 : vector<1x128xf32> to vector<8x128xf32>
    %63 = arith.addf %60, %62 : vector<8x128xf32>
    %c0_33 = arith.constant 0 : index
    %c0_34 = arith.constant 0 : index
    %64 = vector.load %arg11[%c0_33, %c0_34] : memref<1x128xf32, #tpu.memory_space<vmem>>, vector<1x128xf32>
    %c0_35 = arith.constant 0 : index
    %c0_36 = arith.constant 0 : index
    %65 = vector.load %arg12[%c0_35, %c0_36] : memref<1x128xf32, #tpu.memory_space<vmem>>, vector<1x128xf32>
    %cst_37 = arith.constant dense<0.000000e+00> : vector<128xf32>
    %66 = vector.multi_reduction <add>, %63, %cst_37 [0] : vector<8x128xf32> to vector<128xf32>
    %67 = vector.shape_cast %66 : vector<128xf32> to vector<1x128xf32>
    %cst_38 = arith.constant 8.000000e+00 : f32
    %68 = vector.broadcast %cst_38 : f32 to vector<1x128xf32>
    %69 = arith.divf %67, %68 : vector<1x128xf32>
    %70 = vector.broadcast %69 : vector<1x128xf32> to vector<8x128xf32>
    %71 = arith.subf %63, %70 : vector<8x128xf32>
    %72 = vector.broadcast %69 : vector<1x128xf32> to vector<8x128xf32>
    %73 = arith.subf %63, %72 : vector<8x128xf32>
    %74 = arith.mulf %71, %73 : vector<8x128xf32>
    %cst_39 = arith.constant dense<0.000000e+00> : vector<128xf32>
    %75 = vector.multi_reduction <add>, %74, %cst_39 [0] : vector<8x128xf32> to vector<128xf32>
    %76 = vector.shape_cast %75 : vector<128xf32> to vector<1x128xf32>
    %cst_40 = arith.constant 8.000000e+00 : f32
    %77 = vector.broadcast %cst_40 : f32 to vector<1x128xf32>
    %78 = arith.divf %76, %77 : vector<1x128xf32>
    %79 = vector.broadcast %69 : vector<1x128xf32> to vector<8x128xf32>
    %80 = arith.subf %63, %79 : vector<8x128xf32>
    %cst_41 = arith.constant 8.000000e-01 : f32
    %81 = vector.broadcast %cst_41 : f32 to vector<1x128xf32>
    %82 = arith.addf %78, %81 : vector<1x128xf32>
    %83 = math.rsqrt %82 : vector<1x128xf32>
    %84 = vector.broadcast %83 : vector<1x128xf32> to vector<8x128xf32>
    %85 = arith.mulf %80, %84 : vector<8x128xf32>
    %86 = vector.broadcast %64 : vector<1x128xf32> to vector<8x128xf32>
    %87 = arith.mulf %85, %86 : vector<8x128xf32>
    %88 = vector.broadcast %65 : vector<1x128xf32> to vector<8x128xf32>
    %89 = arith.addf %87, %88 : vector<8x128xf32>
    %cst_42 = arith.constant 0.000000e+00 : f32
    %90 = vector.broadcast %cst_42 : f32 to vector<8x128xf32>
    %91 = arith.cmpf ogt, %89, %90 : vector<8x128xf32>
    %cst_43 = arith.constant 2.000000e-01 : f32
    %92 = vector.broadcast %cst_43 : f32 to vector<8x128xf32>
    %93 = arith.mulf %92, %89 : vector<8x128xf32>
    %94 = arith.select %91, %89, %93 : vector<8x128xi1>, vector<8x128xf32>
    %95 = arith.truncf %94 : vector<8x128xf32> to vector<8x128xbf16>
    %c0_44 = arith.constant 0 : index
    %c0_45 = arith.constant 0 : index
    %96 = vector.load %arg13[%c0_44, %c0_45] : memref<128x256xbf16, #tpu.memory_space<vmem>>, vector<128x256xbf16>
    %cst_46 = arith.constant dense<0.000000e+00> : vector<8x256xf32>
    %97 = tpu.matmul %95, %96, %cst_46 {dimension_numbers = #tpu.dot_dimension_numbers<[1], [0], [0], [1], [0, 0, 1, 1], [], []>} : vector<8x128xbf16>, vector<128x256xbf16>, vector<8x256xf32> -> vector<8x256xf32>
    %c0_47 = arith.constant 0 : index
    %c0_48 = arith.constant 0 : index
    %98 = vector.load %arg14[%c0_47, %c0_48] : memref<1x256xf32, #tpu.memory_space<vmem>>, vector<1x256xf32>
    %99 = vector.broadcast %98 : vector<1x256xf32> to vector<8x256xf32>
    %100 = arith.addf %97, %99 : vector<8x256xf32>
    %c0_49 = arith.constant 0 : index
    %c0_50 = arith.constant 0 : index
    %101 = vector.load %arg15[%c0_49, %c0_50] : memref<1x256xf32, #tpu.memory_space<vmem>>, vector<1x256xf32>
    %c0_51 = arith.constant 0 : index
    %c0_52 = arith.constant 0 : index
    %102 = vector.load %arg16[%c0_51, %c0_52] : memref<1x256xf32, #tpu.memory_space<vmem>>, vector<1x256xf32>
    %cst_53 = arith.constant dense<0.000000e+00> : vector<256xf32>
    %103 = vector.multi_reduction <add>, %100, %cst_53 [0] : vector<8x256xf32> to vector<256xf32>
    %104 = vector.shape_cast %103 : vector<256xf32> to vector<1x256xf32>
    %cst_54 = arith.constant 8.000000e+00 : f32
    %105 = vector.broadcast %cst_54 : f32 to vector<1x256xf32>
    %106 = arith.divf %104, %105 : vector<1x256xf32>
    %107 = vector.broadcast %106 : vector<1x256xf32> to vector<8x256xf32>
    %108 = arith.subf %100, %107 : vector<8x256xf32>
    %109 = vector.broadcast %106 : vector<1x256xf32> to vector<8x256xf32>
    %110 = arith.subf %100, %109 : vector<8x256xf32>
    %111 = arith.mulf %108, %110 : vector<8x256xf32>
    %cst_55 = arith.constant dense<0.000000e+00> : vector<256xf32>
    %112 = vector.multi_reduction <add>, %111, %cst_55 [0] : vector<8x256xf32> to vector<256xf32>
    %113 = vector.shape_cast %112 : vector<256xf32> to vector<1x256xf32>
    %cst_56 = arith.constant 8.000000e+00 : f32
    %114 = vector.broadcast %cst_56 : f32 to vector<1x256xf32>
    %115 = arith.divf %113, %114 : vector<1x256xf32>
    %116 = vector.broadcast %106 : vector<1x256xf32> to vector<8x256xf32>
    %117 = arith.subf %100, %116 : vector<8x256xf32>
    %cst_57 = arith.constant 8.000000e-01 : f32
    %118 = vector.broadcast %cst_57 : f32 to vector<1x256xf32>
    %119 = arith.addf %115, %118 : vector<1x256xf32>
    %120 = math.rsqrt %119 : vector<1x256xf32>
    %121 = vector.broadcast %120 : vector<1x256xf32> to vector<8x256xf32>
    %122 = arith.mulf %117, %121 : vector<8x256xf32>
    %123 = vector.broadcast %101 : vector<1x256xf32> to vector<8x256xf32>
    %124 = arith.mulf %122, %123 : vector<8x256xf32>
    %125 = vector.broadcast %102 : vector<1x256xf32> to vector<8x256xf32>
    %126 = arith.addf %124, %125 : vector<8x256xf32>
    %cst_58 = arith.constant 0.000000e+00 : f32
    %127 = vector.broadcast %cst_58 : f32 to vector<8x256xf32>
    %128 = arith.cmpf ogt, %126, %127 : vector<8x256xf32>
    %cst_59 = arith.constant 2.000000e-01 : f32
    %129 = vector.broadcast %cst_59 : f32 to vector<8x256xf32>
    %130 = arith.mulf %129, %126 : vector<8x256xf32>
    %131 = arith.select %128, %126, %130 : vector<8x256xi1>, vector<8x256xf32>
    %132 = arith.truncf %131 : vector<8x256xf32> to vector<8x256xbf16>
    %c0_60 = arith.constant 0 : index
    %c0_61 = arith.constant 0 : index
    %133 = vector.load %arg17[%c0_60, %c0_61] : memref<256x1024xbf16, #tpu.memory_space<vmem>>, vector<256x1024xbf16>
    %cst_62 = arith.constant dense<0.000000e+00> : vector<8x1024xf32>
    %134 = tpu.matmul %132, %133, %cst_62 {dimension_numbers = #tpu.dot_dimension_numbers<[1], [0], [0], [1], [0, 0, 1, 1], [], []>} : vector<8x256xbf16>, vector<256x1024xbf16>, vector<8x1024xf32> -> vector<8x1024xf32>
    %c0_63 = arith.constant 0 : index
    %c0_64 = arith.constant 0 : index
    %135 = vector.load %arg18[%c0_63, %c0_64] : memref<1x1024xf32, #tpu.memory_space<vmem>>, vector<1x1024xf32>
    %136 = vector.broadcast %135 : vector<1x1024xf32> to vector<8x1024xf32>
    %137 = arith.addf %134, %136 : vector<8x1024xf32>
    %138 = math.tanh %137 : vector<8x1024xf32>
    %c0_65 = arith.constant 0 : index
    %c0_66 = arith.constant 0 : index
    %139 = vector.load %arg19[%c0_65, %c0_66] : memref<8x1024xf32, #tpu.memory_space<vmem>>, vector<8x1024xf32>
    tpu.vector_store %arg19[%c0_65, %c0_66], %138 {strides = array<i32>} : memref<8x1024xf32, #tpu.memory_space<vmem>>, vector<8x1024xf32>,
    return
  }
}

</mosaic_0001>

<bundles_post_ra>
// kernel: generator_forward.1
= control target key start
LH: loop header
LB: loop body
LE: loop exit
PB: predicated region body
PF: predicated region fallthrough
CT: control target
= control target key end

     0   :  { %s2883_s0 = inlined_call_operand.vmem [shape: s32[8,1], index: 0, kind: input, shape index: {}]   ;;  %s2884_s1 = inlined_call_operand.hbm [shape: f32[8,8], index: 1, kind: input, shape index: {}]   ;;  %s2885_s2 = inlined_call_operand.hbm [shape: f32[8,32], index: 2, kind: input, shape index: {}]   ;;  %s2886_s3 = inlined_call_operand.vmem [shape: bf16[8,32], index: 3, kind: input, shape index: {}]   ;;  %s2887_s4 = inlined_call_operand.hbm [shape: f32[1,32], index: 4, kind: input, shape index: {}]   ;;  %s2888_s5 = inlined_call_operand.vmem [shape: bf16[32,64], index: 5, kind: input, shape index: {}]   ;;  %s2889_s6 = inlined_call_operand.hbm [shape: f32[1,64], index: 6, kind: input, shape index: {}]   ;;  %s2890_s7 = inlined_call_operand.vmem [shape: f32[1,64], index: 7, kind: input, shape index: {}]   ;;  %s2891_s8 = inlined_call_operand.vmem [shape: f32[1,64], index: 8, kind: input, shape index: {}]   ;;  %s2892_s9 = inlined_call_operand.hbm [shape: bf16[64,128], index: 9, kind: input, shape index: {}]   ;;  %s2893_s10 = inlined_call_operand.vmem [shape: f32[1,128], index: 10, kind: input, shape index: {}]   ;;  %s2894_s11 = inlined_call_operand.vmem [shape: f32[1,128], index: 11, kind: input, shape index: {}]   ;;  %s2895_s12 = inlined_call_operand.vmem [shape: f32[1,128], index: 12, kind: input, shape index: {}]   ;;  %s2896_s13 = inlined_call_operand.hbm [shape: bf16[128,256], index: 13, kind: input, shape index: {}]   ;;  %s2897_s14 = inlined_call_operand.vmem [shape: f32[1,256], index: 14, kind: input, shape index: {}]   ;;  %s2898_s15 = inlined_call_operand.vmem [shape: f32[1,256], index: 15, kind: input, shape index: {}]   ;;  %s2899_s16 = inlined_call_operand.vmem [shape: f32[1,256], index: 16, kind: input, shape index: {}]   ;;  %s2900_s17 = inlined_call_operand.hbm [shape: bf16[256,1024], index: 17, kind: input, shape index: {}]   ;;  %s2901_s18 = inlined_call_operand.vmem [shape: f32[1,1024], index: 18, kind: input, shape index: {}]   ;;  %s2902_s19 = inlined_call_operand.vmem [shape: f32[8,1024], index: 19, kind: output, shape index: {}]  }
   0x1   :  { %2904 = sst [smem:[#allocation17_spill]] %s2883_s0 }
   0x2   :  { %2905 = sst [smem:[#allocation18_spill]] %s2884_s1 }
   0x3   :  { %2906 = sst [smem:[#allocation19_spill]] %s2885_s2 }
   0x4   :  { %2907 = sst [smem:[#allocation20_spill]] %s2886_s3 }
   0x5   :  { %2908 = sst [smem:[#allocation21_spill]] %s2902_s19 }
   0x6   :  { %24 = vsyncpa [#allocation3], 0 }
   0x7   :  { %25 = vsyncpa [#allocation5], 0 }
   0x8   :  { %26 = vsyncpa [#allocation8], 0  ;;  %s2909_s20 = sld [smem:[#allocation19_spill]] }
   0xe   :  { %s46_s21 = sshll.u32 %s2909_s20, 4  ;;  %s47_s21 = int_to_ptr.hbm [resolvable:$true] %s46_s21 }
   0xf   :  { %27 = vsyncpa [#allocation11], 0  ;;  %s2620_s1 = smov [#allocation4]   ;;  %s72_s24 = sshll.u32 %s2889_s6, 4  ;;  %s73_s24 = int_to_ptr.hbm [resolvable:$true] %s72_s24 }
  0x10   :  { %s48_s22 = sshll.u32 %s2620_s1, 4  ;;  %s2621_s25 = smov [#allocation7]   ;;  %s49_s22 = int_to_ptr.vmem [resolvable:$true] %s48_s22 }
  0x11   :  { %51 = dma.hbm_to_vmem [thread:$0]  %s47_s21, 128, %s49_s22, [#allocation5]  }
  0x12   :  { %s74_s3 = sshll.u32 %s2621_s25, 4  ;;  %s105_s28 = sshll.u32 %s2896_s13, 4  ;;  %s75_s3 = int_to_ptr.vmem [resolvable:$true] %s74_s3  ;;  %s106_s28 = int_to_ptr.hbm [resolvable:$true] %s105_s28 }
  0x13   :  { %77 = dma.hbm_to_vmem [thread:$0]  %s73_s24, 16, %s75_s3, [#allocation8]  }
  0x14   :  { %s2622_s29 = smov [#allocation10]   ;;  %s2910_s1 = sld [smem:[#allocation18_spill]] }
  0x15   :  { %s107_s0 = sshll.u32 %s2622_s29, 4  ;;  %s2623_s2 = smov 128   ;;  %s108_s0 = int_to_ptr.vmem [resolvable:$true] %s107_s0 }
  0x16   :  { %s2624_s6 = smov 8   ;;  %s2625_s21 = smov [#allocation2]  }
  0x17   :  { %113 = dma.hbm_to_vmem [thread:$0]  %s106_s28, 2048, %s108_s0, [#allocation11], %s2623_s2, %s2623_s2, %s2624_s6  }
  0x18   :  { %s37_s22 = sshll.u32 %s2625_s21, 4  ;;  %s59_s13 = sshll.u32 %s2887_s4, 4  ;;  %s38_s22 = int_to_ptr.vmem [resolvable:$true] %s37_s22  ;;  %s60_s13 = int_to_ptr.hbm [resolvable:$true] %s59_s13 }
  0x19   :  { %s86_s26 = sshll.u32 %s2892_s9, 4  ;;  %s2626_s27 = smov [#allocation6]   ;;  %s87_s26 = int_to_ptr.hbm [resolvable:$true] %s86_s26 }
  0x1a   :  { %s35_s19 = sshll.u32 %s2910_s1, 4  ;;  %s61_s29 = sshll.u32 %s2626_s27, 4  ;;  %s36_s19 = int_to_ptr.hbm [resolvable:$true] %s35_s19  ;;  %s62_s29 = int_to_ptr.vmem [resolvable:$true] %s61_s29 }
  0x1b   :  { %40 = dma.hbm_to_vmem [thread:$0]  %s36_s19, 128, %s38_s22, [#allocation3]  }
  0x1c   :  { %64 = dma.hbm_to_vmem [thread:$0]  %s60_s13, 16, %s62_s29, [#allocation5]  }
  0x1d   :  { %s2627_s28 = smov [#allocation9]   ;;  %s2628_s30 = smov 64  }
  0x1e   :  { %s88_s0 = sshll.u32 %s2627_s28, 4  ;;  %s2629_s20 = smov 4   ;;  %s89_s0 = int_to_ptr.vmem [resolvable:$true] %s88_s0 }
  0x1f   :  { %94 = dma.hbm_to_vmem [thread:$0]  %s87_s26, 512, %s89_s0, [#allocation8], %s2628_s30, %s2628_s30, %s2629_s20  }
  0x20   :  { %s124_s2 = sshll.u32 %s2900_s17, 4  ;;  %s2630_s19 = smov [#allocation12]   ;;  %s125_s2 = int_to_ptr.hbm [resolvable:$true] %s124_s2 }
  0x21   :  { %s126_s6 = sshll.u32 %s2630_s19, 4  ;;  %s2631_s9 = smov 512   ;;  %s127_s6 = int_to_ptr.vmem [resolvable:$true] %s126_s6 }
  0x22   :  { %s2632_s21 = smov 32  }
  0x23   :  { %132 = dma.hbm_to_vmem [thread:$0]  %s125_s2, 16384, %s127_s6, [#allocation11], %s2631_s9, %s2631_s9, %s2632_s21  }
  0x24   :  { %2612 = dma.done.wait [#allocation3], 128  }
  0x25   :  { %2613 = vsyncadd [#allocation3], 4294967168 }
  0x26   :  { %2614 = dma.done.wait [#allocation5], 144  }
  0x27   :  { %2615 = vsyncadd [#allocation5], 4294967152 }
  0x28   :  { %2616 = dma.done.wait [#allocation8], 528  }
  0x29   :  { %2617 = vsyncadd [#allocation8], 4294966768 }
  0x2a   :  { %2618 = dma.done.wait [#allocation11], 18432  }
  0x2b   :  { %2619 = vsyncadd [#allocation11], 4294948864  ;;  %v2633_v0 = vmov 0   ;;  %vm204_vm0 = vcmask 1043456   ;;  %s2911_s23 = sld [smem:[#allocation17_spill]]  ;;  %v198_v3 = vld [vmem:[#allocation2] sm:$0xff]  ;;  %v164_v7 = vlaneseq }
  0x2c   :  { %2410 = vset.pattern.permute.xlu0 %v2633_v0  ;;  %s2912_s24 = sld [smem:[#allocation20_spill]]  ;;  %vm174_vm1 = vcmask 64512   ;;  %v199_v5 = vpack.c.bf16 %v198_v3, %v198_v3  ;;  %v173_v6 = vld [vmem:[#allocation4] sm:$0xff]  ;;  %v2634_v10 = vmov 0.0   ;;  %v2244_v15 = vld [vmem:[%s2888_s5] sm:$0xff]  ;;  %vm250_vm4 = vcmask 261120  }
  0x2d   :  { %193 = vmatpush.msra.mxu3 %v173_v6  ;;  %v165_v8 = vand.u32 127, %v164_v7  ;;  %v2245_v14 = vld [vmem:[%s2888_s5 + $0x8] sm:$0xff]  ;;  %v2411_v16 = vld [vmem:[#allocation6] ss:$0 sm:$0xff]  ;;  %v2635_v23 = vmov 8.0   ;;  %vm269_vm5 = vcmask 523264  }
  0x2e   :  { %2418 = vrcp.f32 %v2635_v23  ;;  %v2412_v25 = vld [vmem:[#allocation7] ss:$0 sm:$0xff]  ;;  %v2248_v47 = vld [vmem:[#allocation9 + $0x10] sm:$0xff]  ;;  %v2247_v50 = vld [vmem:[#allocation9 + $0x8] sm:$0xff]  ;;  %s2913_s21 = sld [smem:[#allocation21_spill]] }
  0x2f   :  { %v2249_v43 = vld [vmem:[#allocation9 + $0x18] sm:$0xff]  ;;  %v2246_v52 = vld [vmem:[#allocation9] sm:$0xff]  ;;  %v2413_v63 = vld [vmem:[%s2890_s7] ss:$0 sm:$0xff] }
  0x30   :  { %362 = vmatpush.bf16.msrb.mxu3 %v2249_v43  ;;  %v1720_v23 = vld [vmem:[#allocation10 + $0x68] sm:$0xf0] }
  0x31   :  { %v166_v1 = vld [vmem:[%s2911_s23] sm:$0xff] }
  0x32   :  { %v200_v2 = vld [vmem:[%s2912_s24] sm:$0xf]  ;;  %168 = vperm.xlu0 %2410, %v166_v1  }
  0x33   :  { %v206_v4 = vsel %vm204_vm0, %v200_v2, 0  ;;  %v2414_v2 = vld [vmem:[%s2891_s8] ss:$0 sm:$0xff] }
  0x34   :  { %215 = vmatpush.bf16.msra.mxu2 %v206_v4  ;;  %v2419_v24 = vpop.eup %2418  ;;  %363 = vmatpush.bf16.msrb.mxu3 %v2248_v47 }
  0x35   :  { %v278_v26 = vmul.f32 8.0, %v2419_v24  ;;  %vm282_vm6 = vweird.f32 %v2419_v24 }
  0x37   :  { %1641 = vmatmul.msk.bf16.vlgmr.msra.gmra.mxu2 %vm174_vm1, %v199_v5  ;;  %v279_v29 = vsub.f32 1.0, %v278_v26 }
  0x38   :  { %260 = vmatpush.bf16.msrb.mxu2 %v2245_v14  ;;  %364 = vmatpush.bf16.msrb.mxu3 %v2247_v50 }
  0x39   :  { %v280_v32 = vmul.f32 %v2419_v24, %v279_v29  ;;  %v2260_v29 = vld [vmem:[#allocation10 + $0x54] sm:$0xf] }
  0x3b   :  { %v281_v36 = vadd.f32 %v2419_v24, %v280_v32  ;;  %v1712_v32 = vld [vmem:[#allocation10 + $0x58] sm:$0xf0] }
  0x3c   :  { %261 = vmatpush.bf16.msrb.mxu2 %v2244_v15  ;;  %365 = vmatpush.bf16.msrb.mxu3 %v2246_v52  ;;  %v1728_v15 = vld [vmem:[#allocation10 + $0x78] sm:$0xf0]  ;;  %v1686_v52 = vld [vmem:[#allocation10 + $0x20] sm:$0xf] }
  0x3d   :  { %v2770_v39 = vsel %vm282_vm6, %v2419_v24, %v281_v36  ;;  %v2259_v36 = vld [vmem:[#allocation10 + $0x44] sm:$0xf0] }
  0xa4   :  { %v169_v9 = vpop.permute.xlu0 %168 }
  0xa5   :  { %vm170_vm2 = vcmp.eq.s32.totalorder %v165_v8, %v169_v9  ;;  %v2415_v8 = vld [vmem:[%s2893_s10] ss:$0 sm:$0xff] }
  0xa6   :  { %v1639_v11 = vsel %vm170_vm2, 1.0, %v2634_v10  ;;  %v1726_v10 = vld [vmem:[#allocation10 + $0x70] sm:$0xf] }
  0xa7   :  { %1640 = vmatmul.msk.f32.vlgmr.msra.gmra.mxu3 %vm174_vm1, %v1639_v11  ;;  %v2265_v11 = vld [vmem:[#allocation10 + $0x74] sm:$0xf0] }
  0xa8   :  { %v1727_v14 = vor.u32 %v2265_v11, %v1726_v10 }
  0xaa   :  { %515 = vmatpush.bf16.msra.mxu0 %v1727_v14 }
  0xba   :  { %v217_v12 = vpop.f32.mrf.mxu2 }
  0xc2   :  { %v219_v13 = vpop.f32.mrf.mxu2 }
 0x12a   :  { %v195_v17 = vpop.f32.mrf.mxu3 }
 0x12b   :  { %v218_v18 = vadd.f32 %v217_v12, %v195_v17  ;;  %v2264_v12 = vld [vmem:[#allocation10 + $0x74] sm:$0xf] }
 0x12d   :  { %v225_v19 = vadd.f32 %v2411_v16, %v218_v18  ;;  %v1731_v16 = vor.u32 %v2264_v12, %v1728_v15  ;;  %v1718_v18 = vld [vmem:[#allocation10 + $0x60] sm:$0xf] }
 0x12f   :  { %vm226_vm3 = vcmp.gt.f32.partialorder %v225_v19, 0.0  ;;  %v227_v20 = vmul.f32 0.2, %v225_v19  ;;  %528 = vmatpush.bf16.msra.mxu1 %v1731_v16 }
 0x131   :  { %v228_v21 = vsel %vm226_vm3, %v225_v19, %v227_v20  ;;  %v2263_v19 = vld [vmem:[#allocation10 + $0x64] sm:$0xf0]  ;;  %v2262_v20 = vld [vmem:[#allocation10 + $0x64] sm:$0xf] }
 0x132   :  { %v229_v22 = vpack.c.bf16 %v228_v21, %v228_v21  ;;  %v1723_v24 = vor.u32 %v2262_v20, %v1720_v23  ;;  %v2416_v20 = vld [vmem:[%s2894_s11] ss:$0 sm:$0xff] }
 0x133   :  { %v2417_v23 = vld [vmem:[%s2895_s12] ss:$0 sm:$0xff] }
 0x134   :  { %1650 = vmatmul.msk.bf16.vlgmr.msrb.gmra.mxu2 %vm250_vm4, %v229_v22  ;;  %v1719_v22 = vor.u32 %v2263_v19, %v1718_v18  ;;  %529 = vmatpush.bf16.msra.mxu1 %v1723_v24 }
 0x136   :  { %516 = vmatpush.bf16.msra.mxu0 %v1719_v22 }
 0x1b7   :  { %v263_v27 = vpop.f32.mrf.mxu2 }
 0x1b8   :  { %v264_v28 = vadd.f32 %v2412_v25, %v263_v27  ;;  %v1710_v27 = vld [vmem:[#allocation10 + $0x50] sm:$0xf] }
 0x1ba   :  { %v270_v30 = vsel %vm269_vm5, %v264_v28, 0.0 }
 0x1bb   :  { %v271_v31 = vrot.slane %v270_v30, 4 }
 0x1bd   :  { %v272_v33 = vadd.f32 %v271_v31, %v270_v30 }
 0x1bf   :  { %v273_v34 = vrot.slane %v272_v33, 2  ;;  %v265_v35 = vpop.f32.mrf.mxu2 }
 0x1c0   :  { %v1702_v35 = vld [vmem:[#allocation10 + $0x40] sm:$0xf] }
 0x1c1   :  { %v274_v37 = vadd.f32 %v273_v34, %v272_v33  ;;  %v1715_v33 = vor.u32 %v2260_v29, %v1712_v32  ;;  %v1958_v29 = vld [vmem:[#allocation12 + $0x1c0] sm:$0xf] }
 0x1c3   :  { %v275_v38 = vrot.slane %v274_v37, 1  ;;  %530 = vmatpush.bf16.msra.mxu1 %v1715_v33  ;;  %v2390_v33 = vld [vmem:[#allocation12 + $0x3dc] sm:$0xf0] }
 0x1c5   :  { %v276_v40 = vadd.f32 %v275_v38, %v274_v37  ;;  %v2258_v37 = vld [vmem:[#allocation10 + $0x44] sm:$0xf] }
 0x1c7   :  { %v284_v41 = vmul.f32 %v2770_v39, %v276_v40  ;;  %v1703_v40 = vor.u32 %v2259_v36, %v1702_v35  ;;  %v1960_v35 = vld [vmem:[#allocation12 + $0x1e0] sm:$0xf0] }
 0x1c9   :  { %v285_v42 = vsub.f32 %v264_v28, %v284_v41  ;;  %v2261_v28 = vld [vmem:[#allocation10 + $0x54] sm:$0xf0]  ;;  %v1704_v41 = vld [vmem:[#allocation10 + $0x48] sm:$0xf0] }
 0x1ca   :  { %v1711_v31 = vor.u32 %v2261_v28, %v1710_v27 }
 0x1cb   :  { %v286_v44 = vmul.f32 %v285_v42, %v285_v42 }
 0x1cc   :  { %517 = vmatpush.bf16.msra.mxu0 %v1711_v31  ;;  %v2214_v31 = vld [vmem:[#allocation12 + $0x3c0] sm:$0xf] }
 0x1cd   :  { %v287_v45 = vsel %vm269_vm5, %v286_v44, 0.0  ;;  %v1694_v44 = vld [vmem:[#allocation10 + $0x30] sm:$0xf]  ;;  %v2215_v36 = vor.u32 %v2390_v33, %v2214_v31  ;;  %v2350_v31 = vld [vmem:[#allocation12 + $0x29c] sm:$0xf0] }
 0x1ce   :  { %v288_v46 = vrot.slane %v287_v45, 4  ;;  %v1800_v33 = vld [vmem:[#allocation12 + $0xa0] sm:$0xf0] }
 0x1cf   :  { %1420 = vmatpush.bf16.msra.mxu3 %v2215_v36  ;;  %v2346_v36 = vld [vmem:[#allocation12 + $0x284] sm:$0xf] }
 0x1d0   :  { %v289_v48 = vadd.f32 %v288_v46, %v287_v45  ;;  %518 = vmatpush.bf16.msra.mxu0 %v1703_v40  ;;  %v2257_v45 = vld [vmem:[#allocation10 + $0x34] sm:$0xf0]  ;;  %v2256_v46 = vld [vmem:[#allocation10 + $0x34] sm:$0xf]  ;;  %v2216_v40 = vld [vmem:[#allocation12 + $0x3e0] sm:$0xf0] }
 0x1d2   :  { %v290_v49 = vrot.slane %v289_v48, 2 }
 0x1d4   :  { %v291_v51 = vadd.f32 %v290_v49, %v289_v48  ;;  %v1695_v48 = vor.u32 %v2257_v45, %v1694_v44  ;;  %v1696_v49 = vld [vmem:[#allocation10 + $0x38] sm:$0xf0]  ;;  %v2182_v44 = vld [vmem:[#allocation12 + $0x380] sm:$0xf] }
 0x1d5   :  { %v1699_v50 = vor.u32 %v2256_v46, %v1696_v49  ;;  %v2382_v46 = vld [vmem:[#allocation12 + $0x39c] sm:$0xf0] }
 0x1d6   :  { %v292_v53 = vrot.slane %v291_v51, 1  ;;  %519 = vmatpush.bf16.msra.mxu0 %v1695_v48  ;;  %v1928_v48 = vld [vmem:[#allocation12 + $0x1a0] sm:$0xf0]  ;;  %v2183_v49 = vor.u32 %v2382_v46, %v2182_v44  ;;  %v2022_v44 = vld [vmem:[#allocation12 + $0x240] sm:$0xf] }
 0x1d7   :  { %v2342_v46 = vld [vmem:[#allocation12 + $0x25c] sm:$0xf0] }
 0x1d8   :  { %v293_v54 = vadd.f32 %v292_v53, %v291_v51  ;;  %v2255_v53 = vld [vmem:[#allocation10 + $0x24] sm:$0xf0]  ;;  %1421 = vmatpush.bf16.msra.mxu3 %v2183_v49 }
 0x1da   :  { %v294_v55 = vmul.f32 %v293_v54, %v2770_v39  ;;  %v2254_v54 = vld [vmem:[#allocation10 + $0x24] sm:$0xf] }
 0x1dc   :  { %v295_v56 = vadd.f32 0.8, %v294_v55 }
 0x1de   :  { %2420 = vrsqrt.f32 %v295_v56  ;;  %vm302_vm8 = vweird.f32 %v295_v56 }
 0x1e4   :  { %v2421_v57 = vpop.eup %2420 }
 0x1e5   :  { %v297_v58 = vmul.f32 %v2421_v57, %v295_v56  ;;  %vm303_vm7 = vweird.f32 %v2421_v57  ;;  %v1687_v56 = vor.u32 %v2255_v53, %v1686_v52  ;;  %v2184_v52 = vld [vmem:[#allocation12 + $0x3a0] sm:$0xf0] }
 0x1e6   :  { %vm304_vm9 = vmor %vm302_vm8, %vm303_vm7 }
 0x1e7   :  { %v298_v59 = vmul.f32 %v2421_v57, %v297_v58  ;;  %520 = vmatpush.bf16.msra.mxu0 %v1687_v56  ;;  %v2150_v56 = vld [vmem:[#allocation12 + $0x340] sm:$0xf] }
 0x1e9   :  { %v299_v60 = vmul.f32 0.5, %v298_v59 }
 0x1eb   :  { %v300_v61 = vsub.f32 1.5, %v299_v60  ;;  %v1678_v60 = vld [vmem:[#allocation10 + $0x10] sm:$0xf] }
 0x1ed   :  { %v301_v62 = vmul.f32 %v2421_v57, %v300_v61  ;;  %v2253_v61 = vld [vmem:[#allocation10 + $0x14] sm:$0xf0] }
 0x1ef   :  { %v305_v0 = vsel %vm304_vm9, %v2421_v57, %v301_v62  ;;  %v1688_v57 = vld [vmem:[#allocation10 + $0x28] sm:$0xf0]  ;;  %v2252_v62 = vld [vmem:[#allocation10 + $0x14] sm:$0xf] }
 0x1f0   :  { %v306_v1 = vmul.f32 %v305_v0, %v285_v42  ;;  %v1707_v42 = vor.u32 %v2258_v37, %v1704_v41  ;;  %v1691_v58 = vor.u32 %v2254_v54, %v1688_v57  ;;  %v1680_v0 = vld [vmem:[#allocation10 + $0x18] sm:$0xf0]  ;;  %v1894_v54 = vld [vmem:[#allocation12 + $0x140] sm:$0xf] }
 0x1f2   :  { %v310_v3 = vmul.f32 %v2413_v63, %v306_v1  ;;  %531 = vmatpush.bf16.msra.mxu1 %v1707_v42  ;;  %v1679_v63 = vor.u32 %v2253_v61, %v1678_v60  ;;  %v1670_v1 = vld [vmem:[#allocation10] sm:$0xf]  ;;  %v1896_v60 = vld [vmem:[#allocation12 + $0x160] sm:$0xf0] }
 0x1f3   :  { %v1926_v42 = vld [vmem:[#allocation12 + $0x180] sm:$0xf] }
 0x1f4   :  { %v314_v4 = vadd.f32 %v2414_v2, %v310_v3  ;;  %v2251_v2 = vld [vmem:[#allocation10 + $0x4] sm:$0xf0]  ;;  %521 = vmatpush.bf16.msra.mxu0 %v1679_v63  ;;  %v2370_v63 = vld [vmem:[#allocation12 + $0x344] sm:$0xf] }
 0x1f6   :  { %vm315_vm10 = vcmp.gt.f32.partialorder %v314_v4, 0.0  ;;  %v316_v5 = vmul.f32 0.2, %v314_v4  ;;  %532 = vmatpush.bf16.msra.mxu1 %v1699_v50 }
 0x1f8   :  { %v317_v6 = vsel %vm315_vm10, %v314_v4, %v316_v5  ;;  %v1683_v4 = vor.u32 %v2252_v62, %v1680_v0  ;;  %v2250_v5 = vld [vmem:[#allocation10 + $0x4] sm:$0xf] }
 0x1f9   :  { %v318_v7 = vpack.c.bf16 %v317_v6, %v317_v6  ;;  %v1672_v6 = vld [vmem:[#allocation10 + $0x8] sm:$0xf0]  ;;  %v2152_v0 = vld [vmem:[#allocation12 + $0x360] sm:$0xf0] }
 0x1fa   :  { %533 = vmatpush.bf16.msra.mxu1 %v1691_v58  ;;  %v2374_v58 = vld [vmem:[#allocation12 + $0x35c] sm:$0xf0] }
 0x1fb   :  { %1667 = vmatmul.msk.bf16.vlgmr.msrb.gmra.mxu3 %vm269_vm5, %v318_v7  ;;  %v2151_v61 = vor.u32 %v2374_v58, %v2150_v56  ;;  %v1734_v58 = vld [vmem:[#allocation12] sm:$0xf] }
 0x1fd   :  { %1422 = vmatpush.bf16.msra.mxu3 %v2151_v61 }
 0x1fe   :  { %534 = vmatpush.bf16.msra.mxu1 %v1683_v4  ;;  %v2118_v4 = vld [vmem:[#allocation12 + $0x300] sm:$0xf] }
 0x27e   :  { %v367_v9 = vpop.f32.mrf.mxu3 }
 0x27f   :  { %v368_v13 = vadd.f32 %v2415_v8, %v367_v9  ;;  %v1671_v8 = vor.u32 %v2251_v2, %v1670_v1  ;;  %v1675_v9 = vor.u32 %v2250_v5, %v1672_v6  ;;  %v2155_v1 = vor.u32 %v2370_v63, %v2152_v0  ;;  %v1862_v2 = vld [vmem:[#allocation12 + $0x100] sm:$0xf] }
 0x280   :  { %v2366_v6 = vld [vmem:[#allocation12 + $0x31c] sm:$0xf0] }
 0x281   :  { %v373_v17 = vrot.slane %v368_v13, 4  ;;  %522 = vmatpush.bf16.msra.mxu0 %v1671_v8  ;;  %535 = vmatpush.bf16.msra.mxu1 %v1675_v9  ;;  %v1864_v8 = vld [vmem:[#allocation12 + $0x120] sm:$0xf0]  ;;  %v2119_v9 = vor.u32 %v2366_v6, %v2118_v4  ;;  %v2334_v0 = vld [vmem:[#allocation12 + $0x21c] sm:$0xf0] }
 0x282   :  { %v2330_v4 = vld [vmem:[#allocation12 + $0x204] sm:$0xf] }
 0x283   :  { %v374_v21 = vadd.f32 %v373_v17, %v368_v13  ;;  %1423 = vmatpush.bf16.msra.mxu3 %v2119_v9 }
 0x285   :  { %v375_v25 = vrot.slane %v374_v21, 2 }
 0x286   :  { %v369_v26 = vpop.f32.mrf.mxu3 }
 0x287   :  { %v376_v30 = vadd.f32 %v375_v25, %v374_v21 }
 0x289   :  { %v377_v34 = vrot.slane %v376_v30, 1 }
 0x28b   :  { %v378_v38 = vadd.f32 %v377_v34, %v376_v30  ;;  %v2326_v30 = vld [vmem:[#allocation12 + $0x1dc] sm:$0xf0]  ;;  %v2322_v34 = vld [vmem:[#allocation12 + $0x1c4] sm:$0xf] }
 0x28c   :  { %v1959_v32 = vor.u32 %v2326_v30, %v1958_v29  ;;  %v1963_v37 = vor.u32 %v2322_v34, %v1960_v35  ;;  %v2054_v29 = vld [vmem:[#allocation12 + $0x280] sm:$0xf] }
 0x28d   :  { %v379_v43 = vmul.f32 %v378_v38, %v2770_v39  ;;  %v2386_v38 = vld [vmem:[#allocation12 + $0x3c4] sm:$0xf]  ;;  %v2055_v34 = vor.u32 %v2350_v31, %v2054_v29 }
 0x28e   :  { %1407 = vmatpush.bf16.msra.mxu2 %v1959_v32  ;;  %v2219_v41 = vor.u32 %v2386_v38, %v2216_v40  ;;  %1433 = vmatpush.bf16.msrb.mxu0 %v1963_v37  ;;  %v2282_v32 = vld [vmem:[#allocation12 + $0x84] sm:$0xf] }
 0x28f   :  { %v380_v47 = vsub.f32 %v368_v13, %v379_v43  ;;  %v2318_v43 = vld [vmem:[#allocation12 + $0x19c] sm:$0xf0]  ;;  %v1803_v35 = vor.u32 %v2282_v32, %v1800_v33  ;;  %v2056_v37 = vld [vmem:[#allocation12 + $0x2a0] sm:$0xf0]  ;;  %v2383_v32 = vld [vmem:[#allocation12 + $0x3a4] sm:$0xf0] }
 0x290   :  { %1446 = vmatpush.bf16.msrb.mxu1 %v2219_v41  ;;  %v1927_v45 = vor.u32 %v2318_v43, %v1926_v42  ;;  %v2059_v41 = vor.u32 %v2346_v36, %v2056_v37  ;;  %v1766_v42 = vld [vmem:[#allocation12 + $0x40] sm:$0xf]  ;;  %v2315_v33 = vld [vmem:[#allocation12 + $0x18c] sm:$0xf] }
 0x291   :  { %v381_v51 = vmul.f32 %v380_v47, %v380_v47  ;;  %v2278_v43 = vld [vmem:[#allocation12 + $0x5c] sm:$0xf0]  ;;  %v2379_v37 = vld [vmem:[#allocation12 + $0x38c] sm:$0xf] }
 0x292   :  { %1408 = vmatpush.bf16.msra.mxu2 %v1927_v45  ;;  %v1767_v45 = vor.u32 %v2278_v43, %v1766_v42  ;;  %v1902_v43 = vld [vmem:[#allocation12 + $0x148] sm:$0xf] }
 0x293   :  { %v382_v55 = vrot.slane %v381_v51, 4 }
 0x295   :  { %v383_v59 = vadd.f32 %v382_v55, %v381_v51  ;;  %v2378_v51 = vld [vmem:[#allocation12 + $0x384] sm:$0xf]  ;;  %v2310_v55 = vld [vmem:[#allocation12 + $0x15c] sm:$0xf0] }
 0x296   :  { %v2187_v53 = vor.u32 %v2378_v51, %v2184_v52  ;;  %v1895_v57 = vor.u32 %v2310_v55, %v1894_v54  ;;  %v2023_v51 = vor.u32 %v2342_v46, %v2022_v44  ;;  %v2024_v54 = vld [vmem:[#allocation12 + $0x260] sm:$0xf0]  ;;  %v2311_v44 = vld [vmem:[#allocation12 + $0x164] sm:$0xf0] }
 0x297   :  { %v384_v3 = vrot.slane %v383_v59, 2  ;;  %v2158_v46 = vld [vmem:[#allocation12 + $0x348] sm:$0xf] }
 0x298   :  { %1447 = vmatpush.bf16.msrb.mxu1 %v2187_v53  ;;  %1409 = vmatpush.bf16.msra.mxu2 %v1895_v57  ;;  %v2338_v53 = vld [vmem:[#allocation12 + $0x244] sm:$0xf] }
 0x299   :  { %v385_v7 = vadd.f32 %v384_v3, %v383_v59  ;;  %v2306_v59 = vld [vmem:[#allocation12 + $0x144] sm:$0xf]  ;;  %v2302_v3 = vld [vmem:[#allocation12 + $0x11c] sm:$0xf0]  ;;  %v2027_v57 = vor.u32 %v2338_v53, %v2024_v54  ;;  %v2371_v53 = vld [vmem:[#allocation12 + $0x34c] sm:$0xf] }
 0x29a   :  { %v1899_v62 = vor.u32 %v2306_v59, %v1896_v60  ;;  %v1863_v5 = vor.u32 %v2302_v3, %v1862_v2  ;;  %v2270_v59 = vld [vmem:[#allocation12 + $0x1c] sm:$0xf0]  ;;  %v1736_v3 = vld [vmem:[#allocation12 + $0x20] sm:$0xf0]  ;;  %v2160_v54 = vld [vmem:[#allocation12 + $0x368] sm:$0xf0] }
 0x29b   :  { %v386_v10 = vrot.slane %v385_v7, 1  ;;  %v1990_v60 = vld [vmem:[#allocation12 + $0x200] sm:$0xf]  ;;  %v1735_v63 = vor.u32 %v2270_v59, %v1734_v58  ;;  %v2163_v58 = vor.u32 %v2371_v53, %v2160_v54  ;;  %v1776_v53 = vld [vmem:[#allocation12 + $0x68] sm:$0xf0] }
 0x29c   :  { %1448 = vmatpush.bf16.msrb.mxu1 %v2155_v1  ;;  %1410 = vmatpush.bf16.msra.mxu2 %v1863_v5  ;;  %v2266_v1 = vld [vmem:[#allocation12 + $0x4] sm:$0xf]  ;;  %v1991_v2 = vor.u32 %v2334_v0, %v1990_v60  ;;  %v2339_v54 = vld [vmem:[#allocation12 + $0x24c] sm:$0xf] }
 0x29d   :  { %v387_v11 = vadd.f32 %v386_v10, %v385_v7  ;;  %v2298_v7 = vld [vmem:[#allocation12 + $0x104] sm:$0xf] }
 0x29e   :  { %v1867_v10 = vor.u32 %v2298_v7, %v1864_v8  ;;  %v1992_v5 = vld [vmem:[#allocation12 + $0x220] sm:$0xf0]  ;;  %v1739_v8 = vor.u32 %v2266_v1, %v1736_v3  ;;  %v2367_v1 = vld [vmem:[#allocation12 + $0x324] sm:$0xf0]  ;;  %v1872_v3 = vld [vmem:[#allocation12 + $0x128] sm:$0xf0] }
 0x29f   :  { %v388_v12 = vmul.f32 %v387_v11, %v2770_v39  ;;  %v2362_v11 = vld [vmem:[#allocation12 + $0x304] sm:$0xf]  ;;  %v1995_v9 = vor.u32 %v2330_v4, %v1992_v5 }
 0x2a1   :  { %v389_v13 = vadd.f32 0.8, %v388_v12  ;;  %v2120_v12 = vld [vmem:[#allocation12 + $0x320] sm:$0xf0] }
 0x2a3   :  { %2422 = vrsqrt.f32 %v389_v13  ;;  %vm396_vm12 = vweird.f32 %v389_v13 }
 0x2a9   :  { %v2423_v14 = vpop.eup %2422 }
 0x2aa   :  { %v391_v15 = vmul.f32 %v2423_v14, %v389_v13  ;;  %vm397_vm11 = vweird.f32 %v2423_v14  ;;  %v2123_v13 = vor.u32 %v2362_v11, %v2120_v12  ;;  %v2327_v11 = vld [vmem:[#allocation12 + $0x1e4] sm:$0xf0] }
 0x2ab   :  { %vm398_vm13 = vmor %vm396_vm12, %vm397_vm11  ;;  %v2222_v12 = vld [vmem:[#allocation12 + $0x3c8] sm:$0xf] }
 0x2ac   :  { %v392_v16 = vmul.f32 %v2423_v14, %v391_v15  ;;  %v2294_v15 = vld [vmem:[#allocation12 + $0xdc] sm:$0xf0]  ;;  %1449 = vmatpush.bf16.msrb.mxu1 %v2123_v13 }
 0x2ae   :  { %v393_v17 = vmul.f32 0.5, %v392_v16  ;;  %v2086_v16 = vld [vmem:[#allocation12 + $0x2c0] sm:$0xf] }
 0x2b0   :  { %v394_v18 = vsub.f32 1.5, %v393_v17 }
 0x2b2   :  { %v395_v19 = vmul.f32 %v2423_v14, %v394_v18  ;;  %v2358_v18 = vld [vmem:[#allocation12 + $0x2dc] sm:$0xf0] }
 0x2b4   :  { %v399_v21 = vsel %vm398_vm13, %v2423_v14, %v395_v19  ;;  %v1830_v14 = vld [vmem:[#allocation12 + $0xc0] sm:$0xf]  ;;  %v2290_v19 = vld [vmem:[#allocation12 + $0xc4] sm:$0xf] }
 0x2b5   :  { %v400_v22 = vmul.f32 %v399_v21, %v380_v47  ;;  %v2314_v47 = vld [vmem:[#allocation12 + $0x184] sm:$0xf]  ;;  %v1831_v17 = vor.u32 %v2294_v15, %v1830_v14  ;;  %v2087_v21 = vor.u32 %v2358_v18, %v2086_v16  ;;  %v2391_v14 = vld [vmem:[#allocation12 + $0x3e4] sm:$0xf0]  ;;  %v2323_v15 = vld [vmem:[#allocation12 + $0x1cc] sm:$0xf] }
 0x2b6   :  { %v1931_v50 = vor.u32 %v2314_v47, %v1928_v48  ;;  %v2274_v47 = vld [vmem:[#allocation12 + $0x44] sm:$0xf]  ;;  %v1968_v16 = vld [vmem:[#allocation12 + $0x1e8] sm:$0xf0] }
 0x2b7   :  { %v404_v24 = vmul.f32 %v2416_v20, %v400_v22  ;;  %v1832_v20 = vld [vmem:[#allocation12 + $0xe0] sm:$0xf0]  ;;  %1411 = vmatpush.bf16.msra.mxu2 %v1831_v17  ;;  %1424 = vmatpush.bf16.msra.mxu3 %v2087_v21  ;;  %v2387_v21 = vld [vmem:[#allocation12 + $0x3cc] sm:$0xf] }
 0x2b8   :  { %1434 = vmatpush.bf16.msrb.mxu0 %v1931_v50  ;;  %v1835_v22 = vor.u32 %v2290_v19, %v1832_v20  ;;  %v1768_v48 = vld [vmem:[#allocation12 + $0x60] sm:$0xf0]  ;;  %v2223_v19 = vor.u32 %v2391_v14, %v2222_v12  ;;  %v1971_v20 = vor.u32 %v2323_v15, %v1968_v16  ;;  %v2094_v14 = vld [vmem:[#allocation12 + $0x2c8] sm:$0xf]  ;;  %v2291_v16 = vld [vmem:[#allocation12 + $0xcc] sm:$0xf] }
 0x2b9   :  { %v408_v25 = vadd.f32 %v2417_v23, %v404_v24  ;;  %v2354_v23 = vld [vmem:[#allocation12 + $0x2c4] sm:$0xf]  ;;  %v1771_v52 = vor.u32 %v2274_v47, %v1768_v48  ;;  %v2375_v47 = vld [vmem:[#allocation12 + $0x364] sm:$0xf0]  ;;  %v2307_v48 = vld [vmem:[#allocation12 + $0x14c] sm:$0xf] }
 0x2ba   :  { %v2088_v24 = vld [vmem:[#allocation12 + $0x2e0] sm:$0xf0]  ;;  %v2359_v15 = vld [vmem:[#allocation12 + $0x2e4] sm:$0xf0] }
 0x2bb   :  { %vm409_vm14 = vcmp.gt.f32.partialorder %v408_v25, 0.0  ;;  %v410_v26 = vmul.f32 0.2, %v408_v25  ;;  %1425 = vmatpush.bf16.msra.mxu3 %v2055_v34  ;;  %v1936_v34 = vld [vmem:[#allocation12 + $0x1a8] sm:$0xf0] }
 0x2bc   :  { %1435 = vmatpush.bf16.msrb.mxu0 %v1899_v62  ;;  %v1939_v36 = vor.u32 %v2315_v33, %v1936_v34 }
 0x2bd   :  { %v411_v27 = vsel %vm409_vm14, %v408_v25, %v410_v26  ;;  %v429_v25 = vld [vmem:[%s2897_s14] sm:$0x3]  ;;  %v2091_v26 = vor.u32 %v2354_v23, %v2088_v24 }
 0x2be   :  { %v412_v28 = vpack.c.bf16 %v411_v27, %v411_v27  ;;  %v1798_v27 = vld [vmem:[#allocation12 + $0x80] sm:$0xf]  ;;  %v431_v38 = vperm.slane %v429_v25, 0  ;;  %v432_v40 = vperm.slane %v429_v25, 1 }
 0x2bf   :  { %1450 = vmatpush.bf16.msrb.mxu1 %v2091_v26  ;;  %1426 = vmatpush.bf16.msra.mxu3 %v2023_v51  ;;  %v1934_v26 = vld [vmem:[#allocation12 + $0x188] sm:$0xf]  ;;  %v2159_v51 = vor.u32 %v2375_v47, %v2158_v46 }
 0x2c0   :  { %523 = vmatmul.bf16.vlgmr.msra.gmra.mxu0 %v412_v28  ;;  %536 = vmatmul.bf16.vlgmr.msra.gmra.mxu1 %v412_v28  ;;  %v2286_v28 = vld [vmem:[#allocation12 + $0x9c] sm:$0xf0]  ;;  %v2030_v47 = vld [vmem:[#allocation12 + $0x248] sm:$0xf] }
 0x2c1   :  { %1436 = vmatpush.bf16.msrb.mxu0 %v1867_v10  ;;  %v1799_v30 = vor.u32 %v2286_v28, %v1798_v27  ;;  %v1966_v10 = vld [vmem:[#allocation12 + $0x1c8] sm:$0xf] }
 0x2c2   :  { %v1967_v13 = vor.u32 %v2327_v11, %v1966_v10  ;;  %v2319_v27 = vld [vmem:[#allocation12 + $0x1a4] sm:$0xf0] }
 0x2c3   :  { %1412 = vmatpush.bf16.msra.mxu2 %v1799_v30  ;;  %1451 = vmatpush.bf16.msrb.mxu1 %v2059_v41  ;;  %v2190_v28 = vld [vmem:[#allocation12 + $0x388] sm:$0xf]  ;;  %v1935_v31 = vor.u32 %v2319_v27, %v1934_v26 }
 0x2c4   :  { %1427 = vmatpush.bf16.msra.mxu3 %v1991_v2  ;;  %v2299_v2 = vld [vmem:[#allocation12 + $0x10c] sm:$0xf]  ;;  %v1806_v27 = vld [vmem:[#allocation12 + $0x88] sm:$0xf] }
 0x2c5   :  { %1437 = vmatpush.bf16.msrb.mxu0 %v1835_v22  ;;  %v2224_v22 = vld [vmem:[#allocation12 + $0x3e8] sm:$0xf0] }
 0x2c6   :  { %v2227_v25 = vor.u32 %v2387_v21, %v2224_v22  ;;  %v2355_v22 = vld [vmem:[#allocation12 + $0x2cc] sm:$0xf] }
 0x2c7   :  { %1413 = vmatpush.bf16.msra.mxu2 %v1767_v45  ;;  %1452 = vmatpush.bf16.msrb.mxu1 %v2027_v57  ;;  %v1903_v45 = vor.u32 %v2311_v44, %v1902_v43  ;;  %v1774_v43 = vld [vmem:[#allocation12 + $0x48] sm:$0xf] }
 0x2c8   :  { %1472 = vmatpush.bf16.msrb.mxu3 %v2223_v19  ;;  %v2279_v44 = vld [vmem:[#allocation12 + $0x64] sm:$0xf0] }
 0x2c9   :  { %1438 = vmatpush.bf16.msrb.mxu0 %v1803_v35  ;;  %v2191_v35 = vor.u32 %v2383_v32, %v2190_v28  ;;  %v2287_v28 = vld [vmem:[#allocation12 + $0xa4] sm:$0xf0]  ;;  %v1775_v46 = vor.u32 %v2279_v44, %v1774_v43  ;;  %v2392_v43 = vld [vmem:[#allocation12 + $0x3ec] sm:$0xf0]  ;;  %v2324_v44 = vld [vmem:[#allocation12 + $0x1d4] sm:$0xf] }
 0x2cb   :  { %1414 = vmatpush.bf16.msra.mxu2 %v1735_v63  ;;  %1453 = vmatpush.bf16.msrb.mxu1 %v1995_v9  ;;  %v2126_v63 = vld [vmem:[#allocation12 + $0x308] sm:$0xf]  ;;  %v1875_v9 = vor.u32 %v2299_v2, %v1872_v3  ;;  %v2267_v3 = vld [vmem:[#allocation12 + $0xc] sm:$0xf] }
 0x2cc   :  { %1473 = vmatpush.bf16.msrb.mxu3 %v2191_v35  ;;  %v2283_v35 = vld [vmem:[#allocation12 + $0x8c] sm:$0xf]  ;;  %v2335_v2 = vld [vmem:[#allocation12 + $0x224] sm:$0xf0] }
 0x2cd   :  { %1439 = vmatpush.bf16.msrb.mxu0 %v1771_v52  ;;  %v1904_v52 = vld [vmem:[#allocation12 + $0x168] sm:$0xf0] }
 0x2ce   :  { %v1907_v57 = vor.u32 %v2307_v48, %v1904_v52  ;;  %v2343_v48 = vld [vmem:[#allocation12 + $0x264] sm:$0xf0] }
 0x2cf   :  { %1459 = vmatpush.bf16.msrb.mxu2 %v1967_v13  ;;  %1498 = vmatpush.bf16.msra.mxu1 %v2227_v25  ;;  %v1838_v13 = vld [vmem:[#allocation12 + $0xc8] sm:$0xf]  ;;  %v2031_v52 = vor.u32 %v2343_v48, %v2030_v47  ;;  %v2388_v47 = vld [vmem:[#allocation12 + $0x3d4] sm:$0xf] }
 0x2d0   :  { %1474 = vmatpush.bf16.msrb.mxu3 %v2159_v51  ;;  %v2232_v48 = vld [vmem:[#allocation12 + $0x3f0] sm:$0xf0] }
 0x2d1   :  { %1440 = vmatpush.bf16.msrb.mxu0 %v1739_v8  ;;  %v2128_v8 = vld [vmem:[#allocation12 + $0x328] sm:$0xf0] }
 0x2d3   :  { %1460 = vmatpush.bf16.msrb.mxu2 %v1935_v31  ;;  %v2351_v31 = vld [vmem:[#allocation12 + $0x2a4] sm:$0xf0] }
 0x2d5   :  { %1485 = vmatpush.bf16.msra.mxu0 %v1971_v20  ;;  %v2095_v20 = vor.u32 %v2359_v15, %v2094_v14 }
 0x2d7   :  { %1461 = vmatpush.bf16.msrb.mxu2 %v1903_v45 }
 0x2d9   :  { %1486 = vmatpush.bf16.msra.mxu0 %v1939_v36  ;;  %v1808_v36 = vld [vmem:[#allocation12 + $0xa8] sm:$0xf0] }
 0x2dd   :  { %1487 = vmatpush.bf16.msra.mxu0 %v1907_v57 }
 0x2e1   :  { %1488 = vmatpush.bf16.msra.mxu0 %v1875_v9 }
 0x33d   :  { %v524_v49 = vpop.f32.mrf.mxu0  ;;  %v537_v50 = vpop.f32.mrf.mxu1 }
 0x33e   :  { %v2796_v55 = vadd.f32 %v524_v49, %v431_v38  ;;  %v2798_v56 = vadd.f32 %v537_v50, %v432_v40  ;;  %v2192_v38 = vld [vmem:[#allocation12 + $0x3a8] sm:$0xf0] }
 0x33f   :  { %v2195_v42 = vor.u32 %v2379_v37, %v2192_v38  ;;  %v2347_v37 = vld [vmem:[#allocation12 + $0x28c] sm:$0xf] }
 0x340   :  { %v543_v61 = vrot.slane %v2796_v55, 4  ;;  %v549_v62 = vrot.slane %v2798_v56, 4 }
 0x341   :  { %1499 = vmatpush.bf16.msra.mxu1 %v2195_v42  ;;  %v2064_v42 = vld [vmem:[#allocation12 + $0x2a8] sm:$0xf0] }
 0x342   :  { %v544_v6 = vadd.f32 %v543_v61, %v2796_v55  ;;  %v550_v7 = vadd.f32 %v549_v62, %v2798_v56  ;;  %v1870_v61 = vld [vmem:[#allocation12 + $0x108] sm:$0xf]  ;;  %v2067_v45 = vor.u32 %v2347_v37, %v2064_v42 }
 0x343   :  { %v2303_v62 = vld [vmem:[#allocation12 + $0x124] sm:$0xf0] }
 0x344   :  { %v545_v17 = vrot.slane %v544_v6, 2  ;;  %v551_v18 = vrot.slane %v550_v7, 2  ;;  %v1871_v0 = vor.u32 %v2303_v62, %v1870_v61  ;;  %v1742_v62 = vld [vmem:[#allocation12 + $0x8] sm:$0xf] }
 0x345   :  { %v526_v23 = vpop.f32.mrf.mxu0  ;;  %v539_v24 = vpop.f32.mrf.mxu1  ;;  %1500 = vmatpush.bf16.msra.mxu1 %v2163_v58  ;;  %v2032_v58 = vld [vmem:[#allocation12 + $0x268] sm:$0xf0] }
 0x346   :  { %v546_v29 = vadd.f32 %v545_v17, %v544_v6  ;;  %v552_v30 = vadd.f32 %v551_v18, %v550_v7  ;;  %v2127_v6 = vor.u32 %v2367_v1, %v2126_v63  ;;  %v2363_v7 = vld [vmem:[#allocation12 + $0x30c] sm:$0xf]  ;;  %1462 = vmatpush.bf16.msrb.mxu2 %v1871_v0  ;;  %v2035_v61 = vor.u32 %v2339_v54, %v2032_v58  ;;  %v2271_v63 = vld [vmem:[#allocation12 + $0x24] sm:$0xf0]  ;;  %v2320_v54 = vld [vmem:[#allocation12 + $0x1ac] sm:$0xf0] }
 0x347   :  { %v2131_v10 = vor.u32 %v2363_v7, %v2128_v8  ;;  %v1840_v17 = vld [vmem:[#allocation12 + $0xe8] sm:$0xf0]  ;;  %v1998_v0 = vld [vmem:[#allocation12 + $0x208] sm:$0xf]  ;;  %v1743_v1 = vor.u32 %v2271_v63, %v1742_v62  ;;  %v2316_v62 = vld [vmem:[#allocation12 + $0x194] sm:$0xf] }
 0x348   :  { %v547_v40 = vrot.slane %v546_v29, 1  ;;  %v553_v41 = vrot.slane %v552_v30, 1  ;;  %1475 = vmatpush.bf16.msrb.mxu3 %v2127_v6  ;;  %v1843_v21 = vor.u32 %v2291_v16, %v1840_v17  ;;  %v2096_v23 = vld [vmem:[#allocation12 + $0x2e8] sm:$0xf0]  ;;  %v1999_v9 = vor.u32 %v2335_v2, %v1998_v0  ;;  %v1944_v63 = vld [vmem:[#allocation12 + $0x1b0] sm:$0xf0] }
 0x349   :  { %1501 = vmatpush.bf16.msra.mxu1 %v2131_v10  ;;  %v2099_v24 = vor.u32 %v2355_v22, %v2096_v23  ;;  %v1744_v6 = vld [vmem:[#allocation12 + $0x28] sm:$0xf0]  ;;  %v2380_v0 = vld [vmem:[#allocation12 + $0x394] sm:$0xf] }
 0x34a   :  { %v548_v49 = vadd.f32 %v547_v40, %v546_v29  ;;  %v554_v50 = vadd.f32 %v553_v41, %v552_v30  ;;  %v1807_v29 = vor.u32 %v2287_v28, %v1806_v27  ;;  %v2062_v30 = vld [vmem:[#allocation12 + $0x288] sm:$0xf]  ;;  %1489 = vmatpush.bf16.msra.mxu0 %v1843_v21  ;;  %v1811_v41 = vor.u32 %v2283_v35, %v1808_v36  ;;  %v2331_v10 = vld [vmem:[#allocation12 + $0x20c] sm:$0xf] }
 0x34b   :  { %v2063_v34 = vor.u32 %v2351_v31, %v2062_v30  ;;  %v541_v21 = vld [vmem:[%s2898_s15] sm:$0x3] }
 0x34c   :  { %v555_v59 = vmul.f32 %v548_v49, %v2770_v39  ;;  %v556_v60 = vmul.f32 %v554_v50, %v2770_v39  ;;  %1476 = vmatpush.bf16.msrb.mxu3 %v2095_v20  ;;  %v2275_v49 = vld [vmem:[#allocation12 + $0x4c] sm:$0xf] }
 0x34d   :  { %1502 = vmatpush.bf16.msra.mxu1 %v2099_v24  ;;  %v1779_v57 = vor.u32 %v2275_v49, %v1776_v53  ;;  %v542_v24 = vld [vmem:[%s2899_s16] sm:$0x3]  ;;  %v1942_v53 = vld [vmem:[#allocation12 + $0x190] sm:$0xf] }
 0x34e   :  { %v2807_v4 = vsub.f32 %v2796_v55, %v555_v59  ;;  %v2810_v5 = vsub.f32 %v2798_v56, %v556_v60  ;;  %v2295_v55 = vld [vmem:[#allocation12 + $0xe4] sm:$0xf0]  ;;  %1490 = vmatpush.bf16.msra.mxu0 %v1811_v41  ;;  %v607_v31 = vperm.slane %v542_v24, 0  ;;  %v2230_v41 = vld [vmem:[#allocation12 + $0x3d0] sm:$0xf]  ;;  %v1943_v2 = vor.u32 %v2320_v54, %v1942_v53 }
 0x34f   :  { %v1839_v56 = vor.u32 %v2295_v55, %v1838_v13 }
 0x350   :  { %v559_v11 = vmul.f32 %v2807_v4, %v2807_v4  ;;  %v560_v12 = vmul.f32 %v2810_v5, %v2810_v5  ;;  %1477 = vmatpush.bf16.msrb.mxu3 %v2063_v34  ;;  %v608_v34 = vperm.slane %v542_v24, 1  ;;  %v2136_v24 = vld [vmem:[#allocation12 + $0x330] sm:$0xf0] }
 0x351   :  { %1463 = vmatpush.bf16.msrb.mxu2 %v1839_v56  ;;  %1503 = vmatpush.bf16.msra.mxu1 %v2067_v45  ;;  %v1976_v45 = vld [vmem:[#allocation12 + $0x1f0] sm:$0xf0] }
 0x352   :  { %v561_v18 = vrot.slane %v559_v11, 4  ;;  %v567_v19 = vrot.slane %v560_v12, 4  ;;  %1491 = vmatpush.bf16.msra.mxu0 %v1779_v57  ;;  %v1979_v58 = vor.u32 %v2324_v44, %v1976_v45  ;;  %v2070_v44 = vld [vmem:[#allocation12 + $0x290] sm:$0xf] }
 0x353   :  { %v2352_v45 = vld [vmem:[#allocation12 + $0x2ac] sm:$0xf0] }
 0x354   :  { %v562_v25 = vadd.f32 %v561_v18, %v559_v11  ;;  %v568_v26 = vadd.f32 %v567_v19, %v560_v12  ;;  %1478 = vmatpush.bf16.msrb.mxu3 %v2031_v52  ;;  %v2000_v11 = vld [vmem:[#allocation12 + $0x228] sm:$0xf0]  ;;  %v1747_v12 = vor.u32 %v2267_v3, %v1744_v6  ;;  %v2231_v52 = vor.u32 %v2392_v43, %v2230_v41  ;;  %v1910_v6 = vld [vmem:[#allocation12 + $0x150] sm:$0xf] }
 0x355   :  { %1464 = vmatpush.bf16.msrb.mxu2 %v1807_v29  ;;  %1504 = vmatpush.bf16.msra.mxu1 %v2035_v61  ;;  %v2003_v13 = vor.u32 %v2331_v10, %v2000_v11  ;;  %v601_v29 = vperm.slane %v541_v21, 1  ;;  %v2384_v61 = vld [vmem:[#allocation12 + $0x3ac] sm:$0xf0] }
 0x356   :  { %v563_v32 = vrot.slane %v562_v25, 2  ;;  %v569_v33 = vrot.slane %v568_v26, 2  ;;  %1492 = vmatpush.bf16.msra.mxu0 %v1747_v12  ;;  %v2166_v10 = vld [vmem:[#allocation12 + $0x350] sm:$0xf]  ;;  %v2308_v12 = vld [vmem:[#allocation12 + $0x154] sm:$0xf] }
 0x357   :  { %v2376_v11 = vld [vmem:[#allocation12 + $0x36c] sm:$0xf0] }
 0x358   :  { %v564_v38 = vadd.f32 %v563_v32, %v562_v25  ;;  %v570_v40 = vadd.f32 %v569_v33, %v568_v26  ;;  %1479 = vmatpush.bf16.msrb.mxu3 %v1999_v9  ;;  %v600_v26 = vperm.slane %v541_v21, 0  ;;  %v2300_v21 = vld [vmem:[#allocation12 + $0x114] sm:$0xf]  ;;  %v2288_v41 = vld [vmem:[#allocation12 + $0xac] sm:$0xf0] }
 0x359   :  { %1465 = vmatpush.bf16.msrb.mxu2 %v1775_v46  ;;  %1505 = vmatpush.bf16.msra.mxu1 %v2003_v13  ;;  %v1912_v13 = vld [vmem:[#allocation12 + $0x170] sm:$0xf0] }
 0x35a   :  { %v565_v50 = vrot.slane %v564_v38, 1  ;;  %v571_v51 = vrot.slane %v570_v40, 1 }
 0x35c   :  { %v566_v59 = vadd.f32 %v565_v50, %v564_v38  ;;  %v572_v60 = vadd.f32 %v571_v51, %v570_v40  ;;  %v1974_v38 = vld [vmem:[#allocation12 + $0x1d0] sm:$0xf] }
 0x35d   :  { %1466 = vmatpush.bf16.msrb.mxu2 %v1743_v1  ;;  %v2328_v40 = vld [vmem:[#allocation12 + $0x1ec] sm:$0xf0]  ;;  %v2200_v1 = vld [vmem:[#allocation12 + $0x3b0] sm:$0xf0] }
 0x35e   :  { %v573_v7 = vmul.f32 %v566_v59, %v2770_v39  ;;  %v574_v8 = vmul.f32 %v572_v60, %v2770_v39  ;;  %v1975_v51 = vor.u32 %v2328_v40, %v1974_v38  ;;  %v2235_v59 = vor.u32 %v2388_v47, %v2232_v48  ;;  %v2198_v60 = vld [vmem:[#allocation12 + $0x390] sm:$0xf]  ;;  %v1816_v47 = vld [vmem:[#allocation12 + $0xb0] sm:$0xf0] }
 0x35f   :  { %v2199_v3 = vor.u32 %v2384_v61, %v2198_v60  ;;  %v2203_v9 = vor.u32 %v2380_v0, %v2200_v1  ;;  %v1814_v40 = vld [vmem:[#allocation12 + $0x90] sm:$0xf]  ;;  %v2072_v48 = vld [vmem:[#allocation12 + $0x2b0] sm:$0xf0] }
 0x360   :  { %v575_v55 = vadd.f32 0.8, %v573_v7  ;;  %v576_v14 = vadd.f32 0.8, %v574_v8  ;;  %v2312_v7 = vld [vmem:[#allocation12 + $0x16c] sm:$0xf0]  ;;  %v1947_v8 = vor.u32 %v2316_v62, %v1944_v63 }
 0x361   :  { %v2276_v60 = vld [vmem:[#allocation12 + $0x54] sm:$0xf]  ;;  %v1750_v0 = vld [vmem:[#allocation12 + $0x10] sm:$0xf] }
 0x362   :  { %2424 = vrsqrt.f32 %v575_v55  ;;  %vm583_vm1 = vweird.f32 %v575_v55  ;;  %vm593_vm3 = vweird.f32 %v576_v14  ;;  %v1784_v61 = vld [vmem:[#allocation12 + $0x70] sm:$0xf0] }
 0x363   :  { %2426 = vrsqrt.f32 %v576_v14  ;;  %v2340_v62 = vld [vmem:[#allocation12 + $0x254] sm:$0xf] }
 0x364   :  { %v2040_v63 = vld [vmem:[#allocation12 + $0x270] sm:$0xf0] }
 0x368   :  { %v2425_v56 = vpop.eup %2424 }
 0x369   :  { %v2427_v15 = vpop.eup %2426  ;;  %v578_v16 = vmul.f32 %v2425_v56, %v575_v55  ;;  %vm584_vm15 = vweird.f32 %v2425_v56  ;;  %v2372_v55 = vld [vmem:[#allocation12 + $0x354] sm:$0xf] }
 0x36a   :  { %v588_v39 = vmul.f32 %v2427_v15, %v576_v14  ;;  %vm594_vm0 = vweird.f32 %v2427_v15  ;;  %vm585_vm2 = vmor %vm583_vm1, %vm584_vm15  ;;  %v2168_v14 = vld [vmem:[#allocation12 + $0x370] sm:$0xf0] }
 0x36b   :  { %v579_v17 = vmul.f32 %v2425_v56, %v578_v16  ;;  %vm595_vm4 = vmor %vm593_vm3, %vm594_vm0  ;;  %v1878_v16 = vld [vmem:[#allocation12 + $0x110] sm:$0xf] }
 0x36c   :  { %v589_v18 = vmul.f32 %v2427_v15, %v588_v39  ;;  %v2304_v39 = vld [vmem:[#allocation12 + $0x12c] sm:$0xf0] }
 0x36d   :  { %v580_v19 = vmul.f32 0.5, %v579_v17  ;;  %v1915_v17 = vor.u32 %v2308_v12, %v1912_v13  ;;  %v2332_v12 = vld [vmem:[#allocation12 + $0x214] sm:$0xf] }
 0x36e   :  { %v590_v20 = vmul.f32 0.5, %v589_v18  ;;  %v2171_v18 = vor.u32 %v2372_v55, %v2168_v14  ;;  %v2008_v13 = vld [vmem:[#allocation12 + $0x230] sm:$0xf0]  ;;  %v1982_v55 = vld [vmem:[#allocation12 + $0x1d8] sm:$0xf] }
 0x36f   :  { %v581_v22 = vsub.f32 1.5, %v580_v19  ;;  %v2134_v19 = vld [vmem:[#allocation12 + $0x310] sm:$0xf]  ;;  %v2329_v14 = vld [vmem:[#allocation12 + $0x1f4] sm:$0xf0] }
 0x370   :  { %v591_v23 = vsub.f32 1.5, %v590_v20  ;;  %v2368_v20 = vld [vmem:[#allocation12 + $0x32c] sm:$0xf0] }
 0x371   :  { %v582_v25 = vmul.f32 %v2425_v56, %v581_v22  ;;  %v1880_v22 = vld [vmem:[#allocation12 + $0x130] sm:$0xf0] }
 0x372   :  { %v592_v27 = vmul.f32 %v2427_v15, %v591_v23  ;;  %v2364_v23 = vld [vmem:[#allocation12 + $0x314] sm:$0xf] }
 0x373   :  { %v586_v28 = vsel %vm585_vm2, %v2425_v56, %v582_v25  ;;  %v1911_v56 = vor.u32 %v2312_v7, %v1910_v6  ;;  %v1879_v25 = vor.u32 %v2304_v39, %v1878_v16  ;;  %v2006_v6 = vld [vmem:[#allocation12 + $0x210] sm:$0xf]  ;;  %v2325_v16 = vld [vmem:[#allocation12 + $0x1dc] sm:$0xf] }
 0x374   :  { %v597_v30 = vmul.f32 %v586_v28, %v2807_v4  ;;  %v596_v32 = vsel %vm595_vm4, %v2427_v15, %v592_v27  ;;  %v2167_v15 = vor.u32 %v2376_v11, %v2166_v10  ;;  %v1846_v27 = vld [vmem:[#allocation12 + $0xd0] sm:$0xf]  ;;  %v2268_v10 = vld [vmem:[#allocation12 + $0x14] sm:$0xf] }
 0x375   :  { %v598_v33 = vmul.f32 %v596_v32, %v2810_v5  ;;  %v2296_v28 = vld [vmem:[#allocation12 + $0xec] sm:$0xf0]  ;;  %v1752_v11 = vld [vmem:[#allocation12 + $0x30] sm:$0xf0] }
 0x376   :  { %v604_v35 = vmul.f32 %v600_v26, %v597_v30  ;;  %v2135_v26 = vor.u32 %v2368_v20, %v2134_v19  ;;  %v2139_v30 = vor.u32 %v2364_v23, %v2136_v24  ;;  %v2360_v32 = vld [vmem:[#allocation12 + $0x2ec] sm:$0xf0]  ;;  %v2389_v19 = vld [vmem:[#allocation12 + $0x3dc] sm:$0xf]  ;;  %v1983_v23 = vor.u32 %v2329_v14, %v1982_v55  ;;  %v1822_v55 = vld [vmem:[#allocation12 + $0x98] sm:$0xf] }
 0x377   :  { %v605_v36 = vmul.f32 %v601_v29, %v598_v33  ;;  %v1883_v29 = vor.u32 %v2300_v21, %v1880_v22  ;;  %v2292_v33 = vld [vmem:[#allocation12 + $0xd4] sm:$0xf]  ;;  %v2336_v7 = vld [vmem:[#allocation12 + $0x22c] sm:$0xf0]  ;;  %v2240_v20 = vld [vmem:[#allocation12 + $0x3f8] sm:$0xf0]  ;;  %v1755_v21 = vor.u32 %v2268_v10, %v1752_v11  ;;  %v2011_v22 = vor.u32 %v2332_v12, %v2008_v13 }
 0x378   :  { %v611_v37 = vadd.f32 %v607_v31, %v604_v35  ;;  %v2102_v31 = vld [vmem:[#allocation12 + $0x2d0] sm:$0xf]  ;;  %v2356_v35 = vld [vmem:[#allocation12 + $0x2d4] sm:$0xf]  ;;  %v2357_v10 = vld [vmem:[#allocation12 + $0x2dc] sm:$0xf] }
 0x379   :  { %v612_v42 = vadd.f32 %v608_v34, %v605_v36  ;;  %v1848_v34 = vld [vmem:[#allocation12 + $0xf0] sm:$0xf0]  ;;  %v2103_v38 = vor.u32 %v2360_v32, %v2102_v31  ;;  %v2317_v31 = vld [vmem:[#allocation12 + $0x19c] sm:$0xf]  ;;  %v2289_v14 = vld [vmem:[#allocation12 + $0xb4] sm:$0xf0] }
 0x37a   :  { %vm613_vm5 = vcmp.gt.f32.partialorder %v611_v37, 0.0  ;;  %v615_v46 = vmul.f32 0.2, %v611_v37  ;;  %v2104_v36 = vld [vmem:[#allocation12 + $0x2f0] sm:$0xf0] }
 0x37b   :  { %vm614_vm6 = vcmp.gt.f32.partialorder %v612_v42, 0.0  ;;  %v616_v4 = vmul.f32 0.2, %v612_v42  ;;  %v2107_v43 = vor.u32 %v2356_v35, %v2104_v36  ;;  %v1952_v32 = vld [vmem:[#allocation12 + $0x1b8] sm:$0xf0] }
 0x37c   :  { %v617_v49 = vsel %vm613_vm5, %v611_v37, %v615_v46  ;;  %v1847_v37 = vor.u32 %v2296_v28, %v1846_v27  ;;  %v2284_v46 = vld [vmem:[#allocation12 + $0x94] sm:$0xf]  ;;  %v2243_v28 = vor.u32 %v2389_v19, %v2240_v20  ;;  %v2112_v11 = vld [vmem:[#allocation12 + $0x2f8] sm:$0xf0] }
 0x37d   :  { %v2826_v50 = vpack.c.bf16 %v617_v49, %v617_v49  ;;  %v618_v5 = vsel %vm614_vm6, %v612_v42, %v616_v4  ;;  %v1851_v42 = vor.u32 %v2292_v33, %v1848_v34  ;;  %v2348_v4 = vld [vmem:[#allocation12 + $0x294] sm:$0xf]  ;;  %v1815_v49 = vor.u32 %v2288_v41, %v1814_v40  ;;  %v2381_v33 = vld [vmem:[#allocation12 + $0x39c] sm:$0xf] }
 0x37e   :  { %v2828_v57 = vpack.c.bf16 %v618_v5, %v618_v5  ;;  %v2071_v5 = vor.u32 %v2352_v45, %v2070_v44  ;;  %v1819_v53 = vor.u32 %v2284_v46, %v1816_v47  ;;  %v2075_v54 = vor.u32 %v2348_v4, %v2072_v48  ;;  %v2208_v34 = vld [vmem:[#allocation12 + $0x3b8] sm:$0xf0] }
 0x37f   :  { %1415 = vmatmul.bf16.vlgmr.msra.gmra.mxu2 %v2826_v50  ;;  %1441 = vmatmul.bf16.vlgmr.msrb.gmra.mxu0 %v2826_v50  ;;  %v1955_v40 = vor.u32 %v2317_v31, %v1952_v32  ;;  %v2211_v41 = vor.u32 %v2381_v33, %v2208_v34  ;;  %v2309_v44 = vld [vmem:[#allocation12 + $0x15c] sm:$0xf] }
 0x380   :  { %1428 = vmatmul.bf16.vlgmr.msra.gmra.mxu3 %v2828_v57  ;;  %1454 = vmatmul.bf16.vlgmr.msrb.gmra.mxu1 %v2828_v57  ;;  %v1920_v45 = vld [vmem:[#allocation12 + $0x178] sm:$0xf0] }
 0x381   :  { %1511 = vmatpush.bf16.msra.mxu2 %v1975_v51  ;;  %1524 = vmatpush.bf16.msra.mxu3 %v2231_v52  ;;  %v1782_v51 = vld [vmem:[#allocation12 + $0x50] sm:$0xf]  ;;  %v2373_v46 = vld [vmem:[#allocation12 + $0x35c] sm:$0xf] }
 0x382   :  { %1537 = vmatpush.bf16.msrb.mxu0 %v1979_v58  ;;  %1550 = vmatpush.bf16.msrb.mxu1 %v2235_v59  ;;  %v2280_v52 = vld [vmem:[#allocation12 + $0x6c] sm:$0xf0]  ;;  %v2176_v47 = vld [vmem:[#allocation12 + $0x378] sm:$0xf0] }
 0x383   :  { %v2038_v58 = vld [vmem:[#allocation12 + $0x250] sm:$0xf]  ;;  %v1783_v1 = vor.u32 %v2280_v52, %v1782_v51  ;;  %v1923_v51 = vor.u32 %v2309_v44, %v1920_v45  ;;  %v2179_v52 = vor.u32 %v2373_v46, %v2176_v47  ;;  %v2349_v19 = vld [vmem:[#allocation12 + $0x29c] sm:$0xf] }
 0x384   :  { %v2344_v59 = vld [vmem:[#allocation12 + $0x26c] sm:$0xf0]  ;;  %v2080_v20 = vld [vmem:[#allocation12 + $0x2b8] sm:$0xf0] }
 0x385   :  { %1512 = vmatpush.bf16.msra.mxu2 %v1943_v2  ;;  %1525 = vmatpush.bf16.msra.mxu3 %v2199_v3  ;;  %v2039_v2 = vor.u32 %v2344_v59, %v2038_v58  ;;  %v2272_v3 = vld [vmem:[#allocation12 + $0x2c] sm:$0xf0]  ;;  %v2301_v58 = vld [vmem:[#allocation12 + $0x11c] sm:$0xf] }
 0x386   :  { %1538 = vmatpush.bf16.msrb.mxu0 %v1947_v8  ;;  %1551 = vmatpush.bf16.msrb.mxu1 %v2203_v9  ;;  %v1787_v8 = vor.u32 %v2276_v60, %v1784_v61  ;;  %v2043_v9 = vor.u32 %v2340_v62, %v2040_v63  ;;  %v1751_v39 = vor.u32 %v2272_v3, %v1750_v0  ;;  %v1888_v59 = vld [vmem:[#allocation12 + $0x138] sm:$0xf0]  ;;  %v1854_v0 = vld [vmem:[#allocation12 + $0xd8] sm:$0xf] }
 0x387   :  { %v2365_v60 = vld [vmem:[#allocation12 + $0x31c] sm:$0xf] }
 0x388   :  { %v2144_v61 = vld [vmem:[#allocation12 + $0x338] sm:$0xf0] }
 0x389   :  { %1513 = vmatpush.bf16.msra.mxu2 %v1911_v56  ;;  %1526 = vmatpush.bf16.msra.mxu3 %v2167_v15  ;;  %v2238_v56 = vld [vmem:[#allocation12 + $0x3d8] sm:$0xf]  ;;  %v2147_v3 = vor.u32 %v2365_v60, %v2144_v61  ;;  %v2341_v31 = vld [vmem:[#allocation12 + $0x25c] sm:$0xf] }
 0x38a   :  { %1539 = vmatpush.bf16.msrb.mxu0 %v1915_v17  ;;  %1552 = vmatpush.bf16.msrb.mxu1 %v2171_v18  ;;  %v2393_v15 = vld [vmem:[#allocation12 + $0x3f4] sm:$0xf0]  ;;  %v2007_v17 = vor.u32 %v2336_v7, %v2006_v6  ;;  %v1984_v18 = vld [vmem:[#allocation12 + $0x1f8] sm:$0xf0] }
 0x38b   :  { %v2239_v24 = vor.u32 %v2393_v15, %v2238_v56  ;;  %v1987_v27 = vor.u32 %v2325_v16, %v1984_v18  ;;  %v2110_v6 = vld [vmem:[#allocation12 + $0x2d8] sm:$0xf]  ;;  %v2115_v15 = vor.u32 %v2357_v10, %v2112_v11  ;;  %v1824_v18 = vld [vmem:[#allocation12 + $0xb8] sm:$0xf0] }
 0x38c   :  { %v2361_v7 = vld [vmem:[#allocation12 + $0x2f4] sm:$0xf0]  ;;  %v2048_v32 = vld [vmem:[#allocation12 + $0x278] sm:$0xf0] }
 0x38d   :  { %1514 = vmatpush.bf16.msra.mxu2 %v1879_v25  ;;  %1527 = vmatpush.bf16.msra.mxu3 %v2135_v26  ;;  %v1950_v25 = vld [vmem:[#allocation12 + $0x198] sm:$0xf]  ;;  %v2111_v13 = vor.u32 %v2361_v7, %v2110_v6  ;;  %v2333_v44 = vld [vmem:[#allocation12 + $0x21c] sm:$0xf] }
 0x38e   :  { %1540 = vmatpush.bf16.msrb.mxu0 %v1883_v29  ;;  %1553 = vmatpush.bf16.msrb.mxu1 %v2139_v30  ;;  %v2321_v26 = vld [vmem:[#allocation12 + $0x1b4] sm:$0xf0]  ;;  %v2016_v45 = vld [vmem:[#allocation12 + $0x238] sm:$0xf0] }
 0x38f   :  { %1467 = vmatmul.bf16.vlgmr.msrb.gmra.mxu2 %v2826_v50  ;;  %1493 = vmatmul.bf16.vlgmr.msra.gmra.mxu0 %v2826_v50  ;;  %v2206_v29 = vld [vmem:[#allocation12 + $0x398] sm:$0xf]  ;;  %v1951_v35 = vor.u32 %v2321_v26, %v1950_v25  ;;  %v2083_v26 = vor.u32 %v2349_v19, %v2080_v20 }
 0x390   :  { %1480 = vmatmul.bf16.vlgmr.msrb.gmra.mxu3 %v2828_v57  ;;  %1506 = vmatmul.bf16.vlgmr.msra.gmra.mxu1 %v2828_v57  ;;  %v2385_v30 = vld [vmem:[#allocation12 + $0x3b4] sm:$0xf0] }
 0x391   :  { %1515 = vmatpush.bf16.msra.mxu2 %v1847_v37  ;;  %1528 = vmatpush.bf16.msra.mxu3 %v2103_v38  ;;  %v2207_v36 = vor.u32 %v2385_v30, %v2206_v29  ;;  %v1918_v37 = vld [vmem:[#allocation12 + $0x158] sm:$0xf]  ;;  %v2277_v29 = vld [vmem:[#allocation12 + $0x5c] sm:$0xf] }
 0x392   :  { %1541 = vmatpush.bf16.msrb.mxu0 %v1851_v42  ;;  %1554 = vmatpush.bf16.msrb.mxu1 %v2107_v43  ;;  %v2313_v38 = vld [vmem:[#allocation12 + $0x174] sm:$0xf0]  ;;  %v1792_v30 = vld [vmem:[#allocation12 + $0x78] sm:$0xf0] }
 0x393   :  { %v2174_v42 = vld [vmem:[#allocation12 + $0x358] sm:$0xf]  ;;  %v1919_v4 = vor.u32 %v2313_v38, %v1918_v37  ;;  %v1795_v37 = vor.u32 %v2277_v29, %v1792_v30  ;;  %v2051_v38 = vor.u32 %v2341_v31, %v2048_v32 }
 0x394   :  { %v2377_v43 = vld [vmem:[#allocation12 + $0x374] sm:$0xf0] }
 0x395   :  { %1516 = vmatpush.bf16.msra.mxu2 %v1815_v49  ;;  %1529 = vmatpush.bf16.msra.mxu3 %v2071_v5  ;;  %v2175_v48 = vor.u32 %v2377_v43, %v2174_v42  ;;  %v1886_v49 = vld [vmem:[#allocation12 + $0x118] sm:$0xf]  ;;  %v2269_v42 = vld [vmem:[#allocation12 + $0x1c] sm:$0xf] }
 0x396   :  { %1542 = vmatpush.bf16.msrb.mxu0 %v1819_v53  ;;  %1555 = vmatpush.bf16.msrb.mxu1 %v2075_v54  ;;  %v2305_v5 = vld [vmem:[#allocation12 + $0x134] sm:$0xf0]  ;;  %v1760_v43 = vld [vmem:[#allocation12 + $0x38] sm:$0xf0] }
 0x397   :  { %v2142_v53 = vld [vmem:[#allocation12 + $0x318] sm:$0xf]  ;;  %v1887_v62 = vor.u32 %v2305_v5, %v1886_v49  ;;  %v2849_v49 = vld [vmem:[%s2901_s18] sm:$0xff] }
 0x398   :  { %v2369_v54 = vld [vmem:[#allocation12 + $0x334] sm:$0xf0]  ;;  %v752_v5 = vperm.slane %v2849_v49, 1  ;;  %v753_v10 = vperm.slane %v2849_v49, 2 }
 0x399   :  { %1517 = vmatpush.bf16.msra.mxu2 %v1783_v1  ;;  %1530 = vmatpush.bf16.msra.mxu3 %v2039_v2  ;;  %v2143_v63 = vor.u32 %v2369_v54, %v2142_v53  ;;  %v2297_v1 = vld [vmem:[#allocation12 + $0xf4] sm:$0xf0]  ;;  %v1891_v2 = vor.u32 %v2301_v58, %v1888_v59  ;;  %v751_v58 = vperm.slane %v2849_v49, 0 }
 0x39a   :  { %1543 = vmatpush.bf16.msrb.mxu0 %v1787_v8  ;;  %1556 = vmatpush.bf16.msrb.mxu1 %v2043_v9  ;;  %v2293_v8 = vld [vmem:[#allocation12 + $0xdc] sm:$0xf]  ;;  %v1855_v12 = vor.u32 %v2297_v1, %v1854_v0  ;;  %v2078_v16 = vld [vmem:[#allocation12 + $0x298] sm:$0xf]  ;;  %v754_v0 = vperm.slane %v2849_v49, 3 }
 0x39b   :  { %v1856_v9 = vld [vmem:[#allocation12 + $0xf8] sm:$0xf0] }
 0x39c   :  { %v1859_v56 = vor.u32 %v2293_v8, %v1856_v9 }
 0x39d   :  { %1518 = vmatpush.bf16.msra.mxu2 %v1751_v39  ;;  %1531 = vmatpush.bf16.msra.mxu3 %v2007_v17  ;;  %v2353_v39 = vld [vmem:[#allocation12 + $0x2b4] sm:$0xf0]  ;;  %v2285_v17 = vld [vmem:[#allocation12 + $0x9c] sm:$0xf] }
 0x39e   :  { %1544 = vmatpush.bf16.msrb.mxu0 %v1755_v21  ;;  %1557 = vmatpush.bf16.msrb.mxu1 %v2011_v22  ;;  %v1823_v21 = vor.u32 %v2289_v14, %v1822_v55  ;;  %v2079_v22 = vor.u32 %v2353_v39, %v2078_v16  ;;  %v1827_v25 = vor.u32 %v2285_v17, %v1824_v18  ;;  %v756_v17 = vperm.slane %v2849_v49, 5 }
 0x3a0   :  { %1519 = vmatmul.bf16.vlgmr.msra.gmra.mxu2 %v2826_v50  ;;  %1532 = vmatmul.bf16.vlgmr.msra.gmra.mxu3 %v2828_v57 }
 0x3a1   :  { %1563 = vmatpush.bf16.msrb.mxu2 %v1983_v23  ;;  %1576 = vmatpush.bf16.msrb.mxu3 %v2239_v24  ;;  %v1790_v23 = vld [vmem:[#allocation12 + $0x58] sm:$0xf] }
 0x3a2   :  { %1589 = vmatpush.bf16.msra.mxu0 %v1987_v27  ;;  %1602 = vmatpush.bf16.msra.mxu1 %v2243_v28  ;;  %v2281_v24 = vld [vmem:[#allocation12 + $0x74] sm:$0xf0] }
 0x3a3   :  { %1545 = vmatmul.bf16.vlgmr.msrb.gmra.mxu0 %v2826_v50  ;;  %1558 = vmatmul.bf16.vlgmr.msrb.gmra.mxu1 %v2828_v57  ;;  %v2046_v27 = vld [vmem:[#allocation12 + $0x258] sm:$0xf]  ;;  %v1791_v33 = vor.u32 %v2281_v24, %v1790_v23 }
 0x3a4   :  { %v2345_v28 = vld [vmem:[#allocation12 + $0x274] sm:$0xf0] }
 0x3a5   :  { %1564 = vmatpush.bf16.msrb.mxu2 %v1951_v35  ;;  %1577 = vmatpush.bf16.msrb.mxu3 %v2207_v36  ;;  %v2047_v34 = vor.u32 %v2345_v28, %v2046_v27  ;;  %v1758_v35 = vld [vmem:[#allocation12 + $0x18] sm:$0xf] }
 0x3a6   :  { %1590 = vmatpush.bf16.msra.mxu0 %v1955_v40  ;;  %1603 = vmatpush.bf16.msra.mxu1 %v2211_v41  ;;  %v2273_v36 = vld [vmem:[#allocation12 + $0x34] sm:$0xf0] }
 0x3a7   :  { %v2014_v40 = vld [vmem:[#allocation12 + $0x218] sm:$0xf]  ;;  %v1759_v46 = vor.u32 %v2273_v36, %v1758_v35 }
 0x3a8   :  { %v2337_v41 = vld [vmem:[#allocation12 + $0x234] sm:$0xf0] }
 0x3a9   :  { %1565 = vmatpush.bf16.msrb.mxu2 %v1919_v4  ;;  %1578 = vmatpush.bf16.msrb.mxu3 %v2175_v48  ;;  %v2015_v47 = vor.u32 %v2337_v41, %v2014_v40  ;;  %v1763_v4 = vor.u32 %v2269_v42, %v1760_v43  ;;  %v2019_v48 = vor.u32 %v2333_v44, %v2016_v45 }
 0x3aa   :  { %1591 = vmatpush.bf16.msra.mxu0 %v1923_v51  ;;  %1604 = vmatpush.bf16.msra.mxu1 %v2179_v52 }
 0x3ad   :  { %1566 = vmatpush.bf16.msrb.mxu2 %v1887_v62  ;;  %1579 = vmatpush.bf16.msrb.mxu3 %v2143_v63 }
 0x3ae   :  { %1592 = vmatpush.bf16.msra.mxu0 %v1891_v2  ;;  %1605 = vmatpush.bf16.msra.mxu1 %v2147_v3 }
 0x3b1   :  { %1567 = vmatpush.bf16.msrb.mxu2 %v1855_v12  ;;  %1580 = vmatpush.bf16.msrb.mxu3 %v2111_v13 }
 0x3b2   :  { %1593 = vmatpush.bf16.msra.mxu0 %v1859_v56  ;;  %1606 = vmatpush.bf16.msra.mxu1 %v2115_v15 }
 0x3b5   :  { %1568 = vmatpush.bf16.msrb.mxu2 %v1823_v21  ;;  %1581 = vmatpush.bf16.msrb.mxu3 %v2079_v22  ;;  %v755_v22 = vperm.slane %v2849_v49, 4 }
 0x3b6   :  { %1594 = vmatpush.bf16.msra.mxu0 %v1827_v25  ;;  %1607 = vmatpush.bf16.msra.mxu1 %v2083_v26 }
 0x3b9   :  { %1569 = vmatpush.bf16.msrb.mxu2 %v1791_v33  ;;  %1582 = vmatpush.bf16.msrb.mxu3 %v2047_v34  ;;  %v758_v34 = vperm.slane %v2849_v49, 7 }
 0x3ba   :  { %1595 = vmatpush.bf16.msra.mxu0 %v1795_v37  ;;  %1608 = vmatpush.bf16.msra.mxu1 %v2051_v38  ;;  %v757_v38 = vperm.slane %v2849_v49, 6 }
 0x3bd   :  { %1570 = vmatpush.bf16.msrb.mxu2 %v1759_v46  ;;  %1583 = vmatpush.bf16.msrb.mxu3 %v2015_v47 }
 0x3be   :  { %1596 = vmatpush.bf16.msra.mxu0 %v1763_v4  ;;  %1609 = vmatpush.bf16.msra.mxu1 %v2019_v48 }
 0x3c0   :  { %1571 = vmatmul.bf16.vlgmr.msrb.gmra.mxu2 %v2826_v50  ;;  %1584 = vmatmul.bf16.vlgmr.msrb.gmra.mxu3 %v2828_v57 }
 0x3c1   :  { %1597 = vmatmul.bf16.vlgmr.msra.gmra.mxu0 %v2826_v50  ;;  %1610 = vmatmul.bf16.vlgmr.msra.gmra.mxu1 %v2828_v57 }
 0x3fc   :  { %v1442_v51 = vpop.f32.mrf.mxu0 }
 0x3fd   :  { %v1443_v52 = vadd.f32 %v1442_v51, %v752_v5  ;;  %v1455_v53 = vpop.f32.mrf.mxu1 }
 0x3ff   :  { %v1456_v54 = vadd.f32 %v1455_v53, %v1443_v52 }
 0x401   :  { %2428 = vtanh.f32 %v1456_v54 }
 0x402   :  { %v1416_v59 = vpop.f32.mrf.mxu2 }
 0x403   :  { %v1417_v60 = vadd.f32 %v1416_v59, %v751_v58  ;;  %v1429_v61 = vpop.f32.mrf.mxu3 }
 0x404   :  { %v1444_v50 = vpop.f32.mrf.mxu0 }
 0x405   :  { %v1430_v62 = vadd.f32 %v1429_v61, %v1417_v60  ;;  %v1457_v57 = vpop.f32.mrf.mxu1 }
 0x407   :  { %v2429_v63 = vpop.eup %2428  ;;  %2430 = vtanh.f32 %v1430_v62 }
 0x408   :  { %1624 = vst [vmem:[%s2913_s21 + $0x8] sm:$0xff] %v2429_v63 }
 0x40a   :  { %v1418_v1 = vpop.f32.mrf.mxu2 }
 0x40b   :  { %v1431_v2 = vpop.f32.mrf.mxu3 }
 0x40c   :  { %v1494_v3 = vpop.f32.mrf.mxu0 }
 0x40d   :  { %v2431_v6 = vpop.eup %2430  ;;  %v1495_v7 = vadd.f32 %v1494_v3, %v754_v0  ;;  %v1507_v8 = vpop.f32.mrf.mxu1 }
 0x40e   :  { %1623 = vst [vmem:[%s2913_s21] sm:$0xff] %v2431_v6 }
 0x40f   :  { %v1508_v9 = vadd.f32 %v1507_v8, %v1495_v7 }
 0x411   :  { %2432 = vtanh.f32 %v1508_v9 }
 0x412   :  { %v1468_v11 = vpop.f32.mrf.mxu2 }
 0x413   :  { %v1469_v12 = vadd.f32 %v1468_v11, %v753_v10  ;;  %v1481_v13 = vpop.f32.mrf.mxu3 }
 0x414   :  { %v1496_v55 = vpop.f32.mrf.mxu0 }
 0x415   :  { %v1482_v14 = vadd.f32 %v1481_v13, %v1469_v12  ;;  %v1509_v56 = vpop.f32.mrf.mxu1 }
 0x417   :  { %v2433_v15 = vpop.eup %2432  ;;  %2434 = vtanh.f32 %v1482_v14 }
 0x418   :  { %1626 = vst [vmem:[%s2913_s21 + $0x18] sm:$0xff] %v2433_v15 }
 0x41a   :  { %v1470_v16 = vpop.f32.mrf.mxu2 }
 0x41b   :  { %v1483_v39 = vpop.f32.mrf.mxu3 }
 0x41d   :  { %v2435_v18 = vpop.eup %2434 }
 0x41e   :  { %1625 = vst [vmem:[%s2913_s21 + $0x10] sm:$0xff] %v2435_v18 }
 0x420   :  { %v1546_v19 = vpop.f32.mrf.mxu0  ;;  %v1559_v20 = vpop.f32.mrf.mxu1 }
 0x421   :  { %v1547_v21 = vadd.f32 %v1546_v19, %v756_v17 }
 0x423   :  { %v1560_v23 = vadd.f32 %v1559_v20, %v1547_v21  ;;  %v1520_v24 = vpop.f32.mrf.mxu2  ;;  %v1533_v25 = vpop.f32.mrf.mxu3 }
 0x424   :  { %v1521_v26 = vadd.f32 %v1520_v24, %v755_v22 }
 0x425   :  { %2436 = vtanh.f32 %v1560_v23 }
 0x426   :  { %v1534_v27 = vadd.f32 %v1533_v25, %v1521_v26 }
 0x428   :  { %v1548_v28 = vpop.f32.mrf.mxu0  ;;  %v1561_v29 = vpop.f32.mrf.mxu1  ;;  %2438 = vtanh.f32 %v1534_v27 }
 0x42b   :  { %v2437_v30 = vpop.eup %2436  ;;  %v1522_v31 = vpop.f32.mrf.mxu2 }
 0x42c   :  { %1628 = vst [vmem:[%s2913_s21 + $0x28] sm:$0xff] %v2437_v30  ;;  %v1535_v32 = vpop.f32.mrf.mxu3 }
 0x42e   :  { %v2439_v33 = vpop.eup %2438 }
 0x42f   :  { %1627 = vst [vmem:[%s2913_s21 + $0x20] sm:$0xff] %v2439_v33 }
 0x43e   :  { %v1598_v35 = vpop.f32.mrf.mxu0  ;;  %v1611_v36 = vpop.f32.mrf.mxu1 }
 0x43f   :  { %v1599_v37 = vadd.f32 %v1598_v35, %v758_v34 }
 0x441   :  { %v1612_v40 = vadd.f32 %v1611_v36, %v1599_v37 }
 0x443   :  { %2440 = vtanh.f32 %v1612_v40  ;;  %v1572_v41 = vpop.f32.mrf.mxu2  ;;  %v1585_v42 = vpop.f32.mrf.mxu3 }
 0x444   :  { %v1573_v43 = vadd.f32 %v1572_v41, %v757_v38 }
 0x446   :  { %v1586_v44 = vadd.f32 %v1585_v42, %v1573_v43  ;;  %v1600_v45 = vpop.f32.mrf.mxu0  ;;  %v1613_v46 = vpop.f32.mrf.mxu1 }
 0x448   :  { %2442 = vtanh.f32 %v1586_v44 }
 0x449   :  { %v2441_v47 = vpop.eup %2440 }
 0x44a   :  { %1630 = vst [vmem:[%s2913_s21 + $0x38] sm:$0xff] %v2441_v47 }
 0x44b   :  { %v1574_v4 = vpop.f32.mrf.mxu2  ;;  %v1587_v48 = vpop.f32.mrf.mxu3 }
 0x44e   :  { %v2443_v5 = vpop.eup %2442 }
 0x44f   :  { %1629 = vst [vmem:[%s2913_s21 + $0x30] sm:$0xff] %v2443_v5 }
 0x450   :  { %1635 = vsyncpa [#allocation3], 1 }
 0x451   :  { %1636 = vsyncpa [#allocation5], 1 }
 0x452   :  { %1637 = vsyncpa [#allocation8], 1 }
 0x453   :  { %1638 = vsyncpa [#allocation11], 1 }

</bundles_post_ra>
